<compile_context>
chip_gen: v6e
topology: v6e:2x2x1
jax: 0.10.0
libtpu: 0.0.40
codegen_flags: <defaults>
</compile_context>

<pallas_src>
import numpy as np
import jax
import jax.numpy as jnp
from jax import lax
from jax.experimental import pallas as pl
from jax.experimental.pallas import tpu as pltpu

# ----------------------------- hyper-params -----------------------------
B = 2          # batch size
BP = 8         # batch padded to one sublane tile
T = 8          # num_days
TS_F = 4       # time-series features (module requires exactly 4)
CNN_F = 64     # cnn_filters
LSTM_H = 64    # lstm_units
GNN_H = 32     # GCN hidden size
NODE_F = 16    # node_feature_size
STATIC_F = 8   # num_static_features
N_NODES = 8    # number of graph nodes (clients)
K = 5          # Conv1d kernel_size (padding = 2)
BN_EPS = 1e-5

# ----------------- packed weight-blob row layout (all starts 8-aligned) -----------------
ROW_P = 0                 # [ (T+K-1)*BP , B*T ]  pad + time-major permutation
ROW_WCNN = 96             # 5 bands of 8 rows, first TS_F rows valid, cols 0:CNN_F
ROW_WIH = 136             # [CNN_F, 4H]
ROW_WHH = 200             # [H, 4H]
ROW_WG1 = 264             # [NODE_F, GNN_H]
ROW_WG2 = 280             # [GNN_H, GNN_H]
ROW_WS = 312              # [STATIC_F, GNN_H]
ROW_WCL = 320             # [H, 64]
ROW_WCG = 384             # [GNN_H, 64]
ROW_WCS = 416             # [GNN_H, 64]
ROW_WO = 448              # [64, 1]
ROW_AHAT = 512            # [N_NODES, N_NODES]
W_ROWS = 520
W_COLS = 256


# --------------------------------- fused kernel ---------------------------------
def fused_kernel(cid_ref,                      # SMEM scalar-prefetch: [B] int32
                 ts_ref,                       # [B*T, TS_F] raw time series (b-major rows)
                 stat_ref,                     # [B, STATIC_F]
                 nf_ref,                       # [N_NODES, NODE_F]
                 w_ref,                        # [W_ROWS, 256] packed weight blob
                 b_ref,                        # [8, 256]      packed bias/shift blob
                 out_ref):                     # [B, 1]
    f32 = jnp.float32
    H = LSTM_H

    # ---- in-kernel im2col prep: pad + batch-pad + time-major via ONE permutation matmul ----
    p_mat = w_ref[ROW_P:ROW_P + (T + K - 1) * BP, 0:B * T]            # [96, 16]
    x_tm = jnp.dot(p_mat, ts_ref[...], preferred_element_type=f32)    # [(T+K-1)*BP, TS_F]

    # ---- Conv1d(k=5, pad=2) as 5 accumulating matmuls (BN scale folded into weights) ----
    conv = jnp.zeros((T * BP, CNN_F), f32)
    for k in range(K):                                                 # static unroll
        xk = x_tm[k * BP:k * BP + T * BP, :]                           # sublane-aligned slice
        wk = w_ref[ROW_WCNN + 8 * k:ROW_WCNN + 8 * k + TS_F, 0:CNN_F]
        conv = conv + jnp.dot(xk, wk, preferred_element_type=f32)
    conv = jnp.maximum(conv + b_ref[0:1, 0:CNN_F], 0.0)               # folded BN shift + ReLU
    # dropout = identity (eval mode)

    # ---- LSTM: hoisted input projection; one fused 256-wide gate matmul per step ----
    w_ih = w_ref[ROW_WIH:ROW_WIH + CNN_F, 0:4 * H]
    w_hh = w_ref[ROW_WHH:ROW_WHH + H, 0:4 * H]
    xg = jnp.dot(conv, w_ih, preferred_element_type=f32) + b_ref[1:2, 0:4 * H]  # [T*BP, 4H]

    h = jnp.zeros((BP, H), f32)
    c = jnp.zeros((BP, H), f32)
    for t in range(T):                          # static unroll; batch rows are independent,
        r0 = t * BP                             # so the 6 padded rows carry harmless garbage
        g = xg[r0:r0 + BP, :] + jnp.dot(h, w_hh, preferred_element_type=f32)    # [BP, 4H]
        i_g = jax.nn.sigmoid(g[:, 0 * H:1 * H])
        f_g = jax.nn.sigmoid(g[:, 1 * H:2 * H])
        g_g = jnp.tanh(g[:, 2 * H:3 * H])
        o_g = jax.nn.sigmoid(g[:, 3 * H:4 * H])
        c = f_g * c + i_g * g_g
        h = o_g * jnp.tanh(c)
    # h[:B] = last hidden state (dropout = identity)

    # ---- 2-layer GCN over all nodes (dense normalized adjacency, packed in blob) ----
    a_hat = w_ref[ROW_AHAT:ROW_AHAT + N_NODES, 0:N_NODES]
    g1 = jnp.dot(nf_ref[...], w_ref[ROW_WG1:ROW_WG1 + NODE_F, 0:GNN_H],
                 preferred_element_type=f32)
    g1 = jnp.maximum(jnp.dot(a_hat, g1, preferred_element_type=f32) + b_ref[2:3, 0:GNN_H], 0.0)
    g2 = jnp.dot(g1, w_ref[ROW_WG2:ROW_WG2 + GNN_H, 0:GNN_H], preferred_element_type=f32)
    g2 = jnp.maximum(jnp.dot(a_hat, g2, preferred_element_type=f32) + b_ref[3:4, 0:GNN_H], 0.0)

    # Per-client row gather as a one-hot selection matmul (client ids from SMEM prefetch).
    # Out-of-range ids produce a zero row instead of reading stale VMEM.
    row = lax.broadcasted_iota(jnp.int32, (B, N_NODES), 0)
    col = lax.broadcasted_iota(jnp.int32, (B, N_NODES), 1)
    tgt = jnp.zeros((B, N_NODES), jnp.int32)
    for b in range(B):
        tgt = jnp.where(row == b, cid_ref[b], tgt)
    onehot = (col == tgt).astype(f32)                                   # [B, N_NODES]
    gsel = jnp.dot(onehot, g2, preferred_element_type=f32)              # [B, GNN_H]

    # ---- static MLP + combined head (concat == sum of split matmuls) ----
    s = jnp.maximum(jnp.dot(stat_ref[...], w_ref[ROW_WS:ROW_WS + STATIC_F, 0:GNN_H],
                            preferred_element_type=f32) + b_ref[4:5, 0:GNN_H], 0.0)
    h_b = h[0:B, :]
    comb = (jnp.dot(h_b, w_ref[ROW_WCL:ROW_WCL + H, 0:64], preferred_element_type=f32)
            + jnp.dot(gsel, w_ref[ROW_WCG:ROW_WCG + GNN_H, 0:64], preferred_element_type=f32)
            + jnp.dot(s, w_ref[ROW_WCS:ROW_WCS + GNN_H, 0:64], preferred_element_type=f32)
            + b_ref[5:6, 0:64])
    comb = jnp.maximum(comb, 0.0)
    out_ref[...] = (jnp.dot(comb, w_ref[ROW_WO:ROW_WO + 64, 0:1], preferred_element_type=f32)
                    + b_ref[6:7, 0:1])


# ------------------------------- wrapper / glue ---------------------------------
def _vmem_spec(shape):
    zeros = (0,) * len(shape)
    # index_map receives (grid_idx, *scalar_prefetch_refs)
    return pl.BlockSpec(shape, lambda i, *prefetch, z=zeros: z)


@jax.jit
def hybrid_forward(w_blob, b_blob, time_series, static_features, client_ids, node_features):
    ts2d = time_series.reshape(B * T, TS_F)      # free reshape; pad/transpose happens in-kernel
    tensor_args = (ts2d, static_features, node_features, w_blob, b_blob)
    grid_spec = pltpu.PrefetchScalarGridSpec(
        num_scalar_prefetch=1,                    # client_ids -> SMEM, read inside kernel
        grid=(1,),
        in_specs=[_vmem_spec(a.shape) for a in tensor_args],
        out_specs=_vmem_spec((B, 1)),
        scratch_shapes=[],
    )
    return pl.pallas_call(
        fused_kernel,
        out_shape=jax.ShapeDtypeStruct((B, 1), jnp.float32),
        grid_spec=grid_spec,
        compiler_params=pltpu.CompilerParams(dimension_semantics=("arbitrary",)),
    )(client_ids, *tensor_args)


def normalized_adjacency(edge_index, num_nodes):
    # Dense GCN normalization: D^-1/2 (A + I) D^-1/2 (built once at init, packed into blob).
    src, dst = edge_index[0], edge_index[1]
    a = jnp.zeros((num_nodes, num_nodes), jnp.float32).at[src, dst].set(1.0)
    a = a + jnp.eye(num_nodes, dtype=jnp.float32)
    deg = a.sum(axis=1)
    dinv = 1.0 / jnp.sqrt(deg)
    return a * dinv[:, None] * dinv[None, :]


def _build_permute_pad():
    """[96,16] matrix mapping b-major ts rows -> zero-padded, batch-padded, time-major rows."""
    p = np.zeros(((T + K - 1) * BP, B * T), np.float32)
    for tp in range(T + K - 1):
        t_src = tp - (K // 2)
        if 0 <= t_src < T:
            for b in range(B):
                p[tp * BP + b, b * T + t_src] = 1.0
    return jnp.asarray(p)


def pack_params(p, a_hat):
    """Pack every weight/bias (plus a_hat and the im2col permutation) into two f32 blobs."""
    scale = p['bn_gamma'] / jnp.sqrt(p['bn_var'] + BN_EPS)            # [1, CNN_F]
    shift = (p['b_cnn'] - p['bn_mean']) * scale + p['bn_beta']        # conv bias folded in

    wb = jnp.zeros((W_ROWS, W_COLS), jnp.float32)
    wb = wb.at[ROW_P:ROW_P + (T + K - 1) * BP, :B * T].set(_build_permute_pad())
    for k in range(K):
        wb = wb.at[ROW_WCNN + 8 * k:ROW_WCNN + 8 * k + TS_F, :CNN_F].set(p['w_cnn'][k] * scale)
    wb = wb.at[ROW_WIH:ROW_WIH + CNN_F, :4 * LSTM_H].set(p['w_ih'])
    wb = wb.at[ROW_WHH:ROW_WHH + LSTM_H, :4 * LSTM_H].set(p['w_hh'])
    wb = wb.at[ROW_WG1:ROW_WG1 + NODE_F, :GNN_H].set(p['w_g1'])
    wb = wb.at[ROW_WG2:ROW_WG2 + GNN_H, :GNN_H].set(p['w_g2'])
    wb = wb.at[ROW_WS:ROW_WS + STATIC_F, :GNN_H].set(p['w_s'])
    wb = wb.at[ROW_WCL:ROW_WCL + LSTM_H, :64].set(p['w_c'][:LSTM_H])
    wb = wb.at[ROW_WCG:ROW_WCG + GNN_H, :64].set(p['w_c'][LSTM_H:LSTM_H + GNN_H])
    wb = wb.at[ROW_WCS:ROW_WCS + GNN_H, :64].set(p['w_c'][LSTM_H + GNN_H:])
    wb = wb.at[ROW_WO:ROW_WO + 64, :1].set(p['w_o'])
    wb = wb.at[ROW_AHAT:ROW_AHAT + N_NODES, :N_NODES].set(a_hat)

    bb = jnp.zeros((8, W_COLS), jnp.float32)
    bb = bb.at[0, :CNN_F].set(shift[0])
    bb = bb.at[1, :4 * LSTM_H].set(p['b_lstm'][0])
    bb = bb.at[2, :GNN_H].set(p['b_g1'][0])
    bb = bb.at[3, :GNN_H].set(p['b_g2'][0])
    bb = bb.at[4, :GNN_H].set(p['b_s'][0])
    bb = bb.at[5, :64].set(p['b_c'][0])
    bb = bb.at[6, :1].set(p['b_o'][0])
    return wb, bb


# --------------------------- pure-JAX reference check ---------------------------
def reference_forward(params, time_series, static_features, client_ids, a_hat, node_features):
    x_pad = jnp.pad(time_series, ((0, 0), (K // 2, K // 2), (0, 0)))
    conv = sum(jnp.einsum('btc,co->bto', x_pad[:, k:k + T, :], params['w_cnn'][k])
               for k in range(K)) + params['b_cnn'][0]
    conv = ((conv - params['bn_mean'][0]) / jnp.sqrt(params['bn_var'][0] + BN_EPS)
            * params['bn_gamma'][0] + params['bn_beta'][0])
    conv = jnp.maximum(conv, 0.0)

    def step(carry, x_t):
        h, c = carry
        g = x_t @ params['w_ih'] + h @ params['w_hh'] + params['b_lstm'][0]
        i = jax.nn.sigmoid(g[:, :LSTM_H])
        f = jax.nn.sigmoid(g[:, LSTM_H:2 * LSTM_H])
        gg = jnp.tanh(g[:, 2 * LSTM_H:3 * LSTM_H])
        o = jax.nn.sigmoid(g[:, 3 * LSTM_H:])
        c = f * c + i * gg
        h = o * jnp.tanh(c)
        return (h, c), None

    (h, _), _ = lax.scan(step, (jnp.zeros((B, LSTM_H)), jnp.zeros((B, LSTM_H))),
                         jnp.transpose(conv, (1, 0, 2)))
    g1 = jnp.maximum(a_hat @ (node_features @ params['w_g1']) + params['b_g1'][0], 0.0)
    g2 = jnp.maximum(a_hat @ (g1 @ params['w_g2']) + params['b_g2'][0], 0.0)
    gnn_sel = g2[client_ids]
    s = jnp.maximum(static_features @ params['w_s'] + params['b_s'][0], 0.0)
    comb = jnp.concatenate([h, gnn_sel, s], axis=1)
    comb = jnp.maximum(comb @ params['w_c'] + params['b_c'][0], 0.0)
    return comb @ params['w_o'] + params['b_o'][0]


# --------------------------------- params init ----------------------------------
def init_params(key):
    ks = jax.random.split(key, 18)

    def rnd(k, shape, s=0.1):
        return jax.random.normal(k, shape, jnp.float32) * s

    b_ih = rnd(ks[6], (1, 4 * LSTM_H))
    b_hh = rnd(ks[7], (1, 4 * LSTM_H))
    return dict(
        w_cnn=rnd(ks[0], (K, TS_F, CNN_F)),
        b_cnn=rnd(ks[1], (1, CNN_F)),
        bn_gamma=1.0 + rnd(ks[2], (1, CNN_F)),
        bn_beta=rnd(ks[3], (1, CNN_F)),
        bn_mean=jnp.zeros((1, CNN_F), jnp.float32),    # eval-mode running stats
        bn_var=jnp.ones((1, CNN_F), jnp.float32),
        w_ih=rnd(ks[4], (CNN_F, 4 * LSTM_H)),
        w_hh=rnd(ks[5], (LSTM_H, 4 * LSTM_H)),
        b_lstm=b_ih + b_hh,                            # PyTorch nn.LSTM: b_ih + b_hh pre-summed
        w_g1=rnd(ks[8], (NODE_F, GNN_H)),
        b_g1=rnd(ks[9], (1, GNN_H)),
        w_g2=rnd(ks[10], (GNN_H, GNN_H)),
        b_g2=rnd(ks[11], (1, GNN_H)),
        w_s=rnd(ks[12], (STATIC_F, GNN_H)),
        b_s=rnd(ks[13], (1, GNN_H)),
        w_c=rnd(ks[14], (LSTM_H + GNN_H + GNN_H, 64)),
        b_c=rnd(ks[15], (1, 64)),
        w_o=rnd(ks[16], (64, 1)),
        b_o=jnp.zeros((1, 1), jnp.float32),
    )


if __name__ == "__main__":
    key = jax.random.PRNGKey(0)
    kp, k1, k2, k3 = jax.random.split(key, 4)
    params = init_params(kp)

    time_series = jax.random.normal(k1, (B, T, TS_F), jnp.float32)
    static_features = jax.random.normal(k2, (B, STATIC_F), jnp.float32)
    node_features = jax.random.normal(k3, (N_NODES, NODE_F), jnp.float32)
    client_ids = jnp.array([3, 5], dtype=jnp.int32)

    # ring graph: edge_index [2, num_edges], both directions
    src = jnp.arange(N_NODES, dtype=jnp.int32)
    dst = (src + 1) % N_NODES
    edge_index = jnp.concatenate([jnp.stack([src, dst]), jnp.stack([dst, src])], axis=1)
    a_hat = normalized_adjacency(edge_index, N_NODES)

    w_blob, b_blob = pack_params(params, a_hat)     # one-time packing (model state)

    out = jax.block_until_ready(
        hybrid_forward(w_blob, b_blob, time_series, static_features, client_ids, node_features))
    ref = reference_forward(params, time_series, static_features, client_ids, a_hat, node_features)

    assert out.shape == (B, 1), out.shape
    assert jnp.allclose(out, ref, atol=1e-3, rtol=1e-3), (out, ref)
    print("KERNEL_OK")
</pallas_src>

<mosaic_0001>
module attributes {stable_mosaic.version = 11 : i64} {
  func.func @fused_kernel(%arg0: i32, %arg1: memref<2xi32, #tpu.memory_space<smem>>, %arg2: memref<16x4xf32, #tpu.memory_space<vmem>>, %arg3: memref<2x8xf32, #tpu.memory_space<vmem>>, %arg4: memref<8x16xf32, #tpu.memory_space<vmem>>, %arg5: memref<520x256xf32, #tpu.memory_space<vmem>>, %arg6: memref<8x256xf32, #tpu.memory_space<vmem>>, %arg7: memref<2x1xf32, #tpu.memory_space<vmem>>) attributes {dimension_semantics = [#tpu.dimension_semantics<arbitrary>], iteration_bounds = array<i64: 1>, scalar_prefetch = 1 : i64, scratch_operands = 0 : i64, tpu.core_type = #tpu.core_type<tc>, window_params = [{pipeline_mode = #tpu.pipeline_mode<synchronous>, transform_indices = @transform_0, window_bounds = array<i64: 16, 4>}, {pipeline_mode = #tpu.pipeline_mode<synchronous>, transform_indices = @transform_1, window_bounds = array<i64: 2, 8>}, {pipeline_mode = #tpu.pipeline_mode<synchronous>, transform_indices = @transform_2, window_bounds = array<i64: 8, 16>}, {pipeline_mode = #tpu.pipeline_mode<synchronous>, transform_indices = @transform_3, window_bounds = array<i64: 520, 256>}, {pipeline_mode = #tpu.pipeline_mode<synchronous>, transform_indices = @transform_4, window_bounds = array<i64: 8, 256>}, {pipeline_mode = #tpu.pipeline_mode<synchronous>, transform_indices = @transform_5, window_bounds = array<i64: 2, 1>}]} {
    %c0 = arith.constant 0 : index
    %c0_0 = arith.constant 0 : index
    %0 = vector.load %arg5[%c0, %c0_0] : memref<520x256xf32, #tpu.memory_space<vmem>>, vector<96x16xf32>
    %c0_1 = arith.constant 0 : index
    %c0_2 = arith.constant 0 : index
    %1 = vector.load %arg2[%c0_1, %c0_2] : memref<16x4xf32, #tpu.memory_space<vmem>>, vector<16x4xf32>
    %cst = arith.constant dense<0.000000e+00> : vector<96x4xf32>
    %2 = tpu.matmul %0, %1, %cst {dimension_numbers = #tpu.dot_dimension_numbers<[1], [0], [0], [1], [0, 0, 1, 1], [], []>} : vector<96x16xf32>, vector<16x4xf32>, vector<96x4xf32> -> vector<96x4xf32>
    %cst_3 = arith.constant 0.000000e+00 : f32
    %3 = vector.broadcast %cst_3 : f32 to vector<64x64xf32>
    %4 = vector.extract_strided_slice %2 {offsets = [0, 0], sizes = [64, 4], strides = [1, 1]} : vector<96x4xf32> to vector<64x4xf32>
    %c96 = arith.constant 96 : index
    %c0_4 = arith.constant 0 : index
    %5 = vector.load %arg5[%c96, %c0_4] : memref<520x256xf32, #tpu.memory_space<vmem>>, vector<4x64xf32>
    %cst_5 = arith.constant dense<0.000000e+00> : vector<64x64xf32>
    %6 = tpu.matmul %4, %5, %cst_5 {dimension_numbers = #tpu.dot_dimension_numbers<[1], [0], [0], [1], [0, 0, 1, 1], [], []>} : vector<64x4xf32>, vector<4x64xf32>, vector<64x64xf32> -> vector<64x64xf32>
    %7 = arith.addf %3, %6 : vector<64x64xf32>
    %8 = vector.extract_strided_slice %2 {offsets = [8, 0], sizes = [64, 4], strides = [1, 1]} : vector<96x4xf32> to vector<64x4xf32>
    %c104 = arith.constant 104 : index
    %c0_6 = arith.constant 0 : index
    %9 = vector.load %arg5[%c104, %c0_6] : memref<520x256xf32, #tpu.memory_space<vmem>>, vector<4x64xf32>
    %cst_7 = arith.constant dense<0.000000e+00> : vector<64x64xf32>
    %10 = tpu.matmul %8, %9, %cst_7 {dimension_numbers = #tpu.dot_dimension_numbers<[1], [0], [0], [1], [0, 0, 1, 1], [], []>} : vector<64x4xf32>, vector<4x64xf32>, vector<64x64xf32> -> vector<64x64xf32>
    %11 = arith.addf %7, %10 : vector<64x64xf32>
    %12 = vector.extract_strided_slice %2 {offsets = [16, 0], sizes = [64, 4], strides = [1, 1]} : vector<96x4xf32> to vector<64x4xf32>
    %c112 = arith.constant 112 : index
    %c0_8 = arith.constant 0 : index
    %13 = vector.load %arg5[%c112, %c0_8] : memref<520x256xf32, #tpu.memory_space<vmem>>, vector<4x64xf32>
    %cst_9 = arith.constant dense<0.000000e+00> : vector<64x64xf32>
    %14 = tpu.matmul %12, %13, %cst_9 {dimension_numbers = #tpu.dot_dimension_numbers<[1], [0], [0], [1], [0, 0, 1, 1], [], []>} : vector<64x4xf32>, vector<4x64xf32>, vector<64x64xf32> -> vector<64x64xf32>
    %15 = arith.addf %11, %14 : vector<64x64xf32>
    %16 = vector.extract_strided_slice %2 {offsets = [24, 0], sizes = [64, 4], strides = [1, 1]} : vector<96x4xf32> to vector<64x4xf32>
    %c120 = arith.constant 120 : index
    %c0_10 = arith.constant 0 : index
    %17 = vector.load %arg5[%c120, %c0_10] : memref<520x256xf32, #tpu.memory_space<vmem>>, vector<4x64xf32>
    %cst_11 = arith.constant dense<0.000000e+00> : vector<64x64xf32>
    %18 = tpu.matmul %16, %17, %cst_11 {dimension_numbers = #tpu.dot_dimension_numbers<[1], [0], [0], [1], [0, 0, 1, 1], [], []>} : vector<64x4xf32>, vector<4x64xf32>, vector<64x64xf32> -> vector<64x64xf32>
    %19 = arith.addf %15, %18 : vector<64x64xf32>
    %20 = vector.extract_strided_slice %2 {offsets = [32, 0], sizes = [64, 4], strides = [1, 1]} : vector<96x4xf32> to vector<64x4xf32>
    %c128 = arith.constant 128 : index
    %c0_12 = arith.constant 0 : index
    %21 = vector.load %arg5[%c128, %c0_12] : memref<520x256xf32, #tpu.memory_space<vmem>>, vector<4x64xf32>
    %cst_13 = arith.constant dense<0.000000e+00> : vector<64x64xf32>
    %22 = tpu.matmul %20, %21, %cst_13 {dimension_numbers = #tpu.dot_dimension_numbers<[1], [0], [0], [1], [0, 0, 1, 1], [], []>} : vector<64x4xf32>, vector<4x64xf32>, vector<64x64xf32> -> vector<64x64xf32>
    %23 = arith.addf %19, %22 : vector<64x64xf32>
    %c0_14 = arith.constant 0 : index
    %c0_15 = arith.constant 0 : index
    %24 = vector.load %arg6[%c0_14, %c0_15] : memref<8x256xf32, #tpu.memory_space<vmem>>, vector<1x64xf32>
    %25 = vector.broadcast %24 : vector<1x64xf32> to vector<64x64xf32>
    %26 = arith.addf %23, %25 : vector<64x64xf32>
    %cst_16 = arith.constant 0.000000e+00 : f32
    %27 = vector.broadcast %cst_16 : f32 to vector<64x64xf32>
    %28 = arith.maximumf %26, %27 : vector<64x64xf32>
    %c136 = arith.constant 136 : index
    %c0_17 = arith.constant 0 : index
    %29 = vector.load %arg5[%c136, %c0_17] : memref<520x256xf32, #tpu.memory_space<vmem>>, vector<64x256xf32>
    %c200 = arith.constant 200 : index
    %c0_18 = arith.constant 0 : index
    %30 = vector.load %arg5[%c200, %c0_18] : memref<520x256xf32, #tpu.memory_space<vmem>>, vector<64x256xf32>
    %cst_19 = arith.constant dense<0.000000e+00> : vector<64x256xf32>
    %31 = tpu.matmul %28, %29, %cst_19 {dimension_numbers = #tpu.dot_dimension_numbers<[1], [0], [0], [1], [0, 0, 1, 1], [], []>} : vector<64x64xf32>, vector<64x256xf32>, vector<64x256xf32> -> vector<64x256xf32>
    %c1 = arith.constant 1 : index
    %c0_20 = arith.constant 0 : index
    %32 = vector.load %arg6[%c1, %c0_20] : memref<8x256xf32, #tpu.memory_space<vmem>>, vector<1x256xf32>
    %33 = vector.broadcast %32 : vector<1x256xf32> to vector<64x256xf32>
    %34 = arith.addf %31, %33 : vector<64x256xf32>
    %cst_21 = arith.constant 0.000000e+00 : f32
    %35 = vector.broadcast %cst_21 : f32 to vector<8x64xf32>
    %cst_22 = arith.constant 0.000000e+00 : f32
    %36 = vector.broadcast %cst_22 : f32 to vector<8x64xf32>
    %37 = vector.extract_strided_slice %34 {offsets = [0, 0], sizes = [8, 256], strides = [1, 1]} : vector<64x256xf32> to vector<8x256xf32>
    %cst_23 = arith.constant dense<0.000000e+00> : vector<8x256xf32>
    %38 = tpu.matmul %35, %30, %cst_23 {dimension_numbers = #tpu.dot_dimension_numbers<[1], [0], [0], [1], [0, 0, 1, 1], [], []>} : vector<8x64xf32>, vector<64x256xf32>, vector<8x256xf32> -> vector<8x256xf32>
    %39 = arith.addf %37, %38 : vector<8x256xf32>
    %40 = vector.extract_strided_slice %39 {offsets = [0, 0], sizes = [8, 64], strides = [1, 1]} : vector<8x256xf32> to vector<8x64xf32>
    %41 = arith.negf %40 : vector<8x64xf32>
    %42 = math.exp %41 : vector<8x64xf32>
    %cst_24 = arith.constant 1.000000e+00 : f32
    %43 = vector.broadcast %cst_24 : f32 to vector<8x64xf32>
    %44 = arith.addf %43, %42 : vector<8x64xf32>
    %45 = arith.divf %43, %44 : vector<8x64xf32>
    %46 = vector.extract_strided_slice %39 {offsets = [0, 64], sizes = [8, 64], strides = [1, 1]} : vector<8x256xf32> to vector<8x64xf32>
    %47 = arith.negf %46 : vector<8x64xf32>
    %48 = math.exp %47 : vector<8x64xf32>
    %cst_25 = arith.constant 1.000000e+00 : f32
    %49 = vector.broadcast %cst_25 : f32 to vector<8x64xf32>
    %50 = arith.addf %49, %48 : vector<8x64xf32>
    %51 = arith.divf %49, %50 : vector<8x64xf32>
    %52 = vector.extract_strided_slice %39 {offsets = [0, 128], sizes = [8, 64], strides = [1, 1]} : vector<8x256xf32> to vector<8x64xf32>
    %53 = math.tanh %52 : vector<8x64xf32>
    %54 = vector.extract_strided_slice %39 {offsets = [0, 192], sizes = [8, 64], strides = [1, 1]} : vector<8x256xf32> to vector<8x64xf32>
    %55 = arith.negf %54 : vector<8x64xf32>
    %56 = math.exp %55 : vector<8x64xf32>
    %cst_26 = arith.constant 1.000000e+00 : f32
    %57 = vector.broadcast %cst_26 : f32 to vector<8x64xf32>
    %58 = arith.addf %57, %56 : vector<8x64xf32>
    %59 = arith.divf %57, %58 : vector<8x64xf32>
    %60 = arith.mulf %51, %36 : vector<8x64xf32>
    %61 = arith.mulf %45, %53 : vector<8x64xf32>
    %62 = arith.addf %60, %61 : vector<8x64xf32>
    %63 = math.tanh %62 : vector<8x64xf32>
    %64 = arith.mulf %59, %63 : vector<8x64xf32>
    %65 = vector.extract_strided_slice %34 {offsets = [8, 0], sizes = [8, 256], strides = [1, 1]} : vector<64x256xf32> to vector<8x256xf32>
    %cst_27 = arith.constant dense<0.000000e+00> : vector<8x256xf32>
    %66 = tpu.matmul %64, %30, %cst_27 {dimension_numbers = #tpu.dot_dimension_numbers<[1], [0], [0], [1], [0, 0, 1, 1], [], []>} : vector<8x64xf32>, vector<64x256xf32>, vector<8x256xf32> -> vector<8x256xf32>
    %67 = arith.addf %65, %66 : vector<8x256xf32>
    %68 = vector.extract_strided_slice %67 {offsets = [0, 0], sizes = [8, 64], strides = [1, 1]} : vector<8x256xf32> to vector<8x64xf32>
    %69 = arith.negf %68 : vector<8x64xf32>
    %70 = math.exp %69 : vector<8x64xf32>
    %cst_28 = arith.constant 1.000000e+00 : f32
    %71 = vector.broadcast %cst_28 : f32 to vector<8x64xf32>
    %72 = arith.addf %71, %70 : vector<8x64xf32>
    %73 = arith.divf %71, %72 : vector<8x64xf32>
    %74 = vector.extract_strided_slice %67 {offsets = [0, 64], sizes = [8, 64], strides = [1, 1]} : vector<8x256xf32> to vector<8x64xf32>
    %75 = arith.negf %74 : vector<8x64xf32>
    %76 = math.exp %75 : vector<8x64xf32>
    %cst_29 = arith.constant 1.000000e+00 : f32
    %77 = vector.broadcast %cst_29 : f32 to vector<8x64xf32>
    %78 = arith.addf %77, %76 : vector<8x64xf32>
    %79 = arith.divf %77, %78 : vector<8x64xf32>
    %80 = vector.extract_strided_slice %67 {offsets = [0, 128], sizes = [8, 64], strides = [1, 1]} : vector<8x256xf32> to vector<8x64xf32>
    %81 = math.tanh %80 : vector<8x64xf32>
    %82 = vector.extract_strided_slice %67 {offsets = [0, 192], sizes = [8, 64], strides = [1, 1]} : vector<8x256xf32> to vector<8x64xf32>
    %83 = arith.negf %82 : vector<8x64xf32>
    %84 = math.exp %83 : vector<8x64xf32>
    %cst_30 = arith.constant 1.000000e+00 : f32
    %85 = vector.broadcast %cst_30 : f32 to vector<8x64xf32>
    %86 = arith.addf %85, %84 : vector<8x64xf32>
    %87 = arith.divf %85, %86 : vector<8x64xf32>
    %88 = arith.mulf %79, %62 : vector<8x64xf32>
    %89 = arith.mulf %73, %81 : vector<8x64xf32>
    %90 = arith.addf %88, %89 : vector<8x64xf32>
    %91 = math.tanh %90 : vector<8x64xf32>
    %92 = arith.mulf %87, %91 : vector<8x64xf32>
    %93 = vector.extract_strided_slice %34 {offsets = [16, 0], sizes = [8, 256], strides = [1, 1]} : vector<64x256xf32> to vector<8x256xf32>
    %cst_31 = arith.constant dense<0.000000e+00> : vector<8x256xf32>
    %94 = tpu.matmul %92, %30, %cst_31 {dimension_numbers = #tpu.dot_dimension_numbers<[1], [0], [0], [1], [0, 0, 1, 1], [], []>} : vector<8x64xf32>, vector<64x256xf32>, vector<8x256xf32> -> vector<8x256xf32>
    %95 = arith.addf %93, %94 : vector<8x256xf32>
    %96 = vector.extract_strided_slice %95 {offsets = [0, 0], sizes = [8, 64], strides = [1, 1]} : vector<8x256xf32> to vector<8x64xf32>
    %97 = arith.negf %96 : vector<8x64xf32>
    %98 = math.exp %97 : vector<8x64xf32>
    %cst_32 = arith.constant 1.000000e+00 : f32
    %99 = vector.broadcast %cst_32 : f32 to vector<8x64xf32>
    %100 = arith.addf %99, %98 : vector<8x64xf32>
    %101 = arith.divf %99, %100 : vector<8x64xf32>
    %102 = vector.extract_strided_slice %95 {offsets = [0, 64], sizes = [8, 64], strides = [1, 1]} : vector<8x256xf32> to vector<8x64xf32>
    %103 = arith.negf %102 : vector<8x64xf32>
    %104 = math.exp %103 : vector<8x64xf32>
    %cst_33 = arith.constant 1.000000e+00 : f32
    %105 = vector.broadcast %cst_33 : f32 to vector<8x64xf32>
    %106 = arith.addf %105, %104 : vector<8x64xf32>
    %107 = arith.divf %105, %106 : vector<8x64xf32>
    %108 = vector.extract_strided_slice %95 {offsets = [0, 128], sizes = [8, 64], strides = [1, 1]} : vector<8x256xf32> to vector<8x64xf32>
    %109 = math.tanh %108 : vector<8x64xf32>
    %110 = vector.extract_strided_slice %95 {offsets = [0, 192], sizes = [8, 64], strides = [1, 1]} : vector<8x256xf32> to vector<8x64xf32>
    %111 = arith.negf %110 : vector<8x64xf32>
    %112 = math.exp %111 : vector<8x64xf32>
    %cst_34 = arith.constant 1.000000e+00 : f32
    %113 = vector.broadcast %cst_34 : f32 to vector<8x64xf32>
    %114 = arith.addf %113, %112 : vector<8x64xf32>
    %115 = arith.divf %113, %114 : vector<8x64xf32>
    %116 = arith.mulf %107, %90 : vector<8x64xf32>
    %117 = arith.mulf %101, %109 : vector<8x64xf32>
    %118 = arith.addf %116, %117 : vector<8x64xf32>
    %119 = math.tanh %118 : vector<8x64xf32>
    %120 = arith.mulf %115, %119 : vector<8x64xf32>
    %121 = vector.extract_strided_slice %34 {offsets = [24, 0], sizes = [8, 256], strides = [1, 1]} : vector<64x256xf32> to vector<8x256xf32>
    %cst_35 = arith.constant dense<0.000000e+00> : vector<8x256xf32>
    %122 = tpu.matmul %120, %30, %cst_35 {dimension_numbers = #tpu.dot_dimension_numbers<[1], [0], [0], [1], [0, 0, 1, 1], [], []>} : vector<8x64xf32>, vector<64x256xf32>, vector<8x256xf32> -> vector<8x256xf32>
    %123 = arith.addf %121, %122 : vector<8x256xf32>
    %124 = vector.extract_strided_slice %123 {offsets = [0, 0], sizes = [8, 64], strides = [1, 1]} : vector<8x256xf32> to vector<8x64xf32>
    %125 = arith.negf %124 : vector<8x64xf32>
    %126 = math.exp %125 : vector<8x64xf32>
    %cst_36 = arith.constant 1.000000e+00 : f32
    %127 = vector.broadcast %cst_36 : f32 to vector<8x64xf32>
    %128 = arith.addf %127, %126 : vector<8x64xf32>
    %129 = arith.divf %127, %128 : vector<8x64xf32>
    %130 = vector.extract_strided_slice %123 {offsets = [0, 64], sizes = [8, 64], strides = [1, 1]} : vector<8x256xf32> to vector<8x64xf32>
    %131 = arith.negf %130 : vector<8x64xf32>
    %132 = math.exp %131 : vector<8x64xf32>
    %cst_37 = arith.constant 1.000000e+00 : f32
    %133 = vector.broadcast %cst_37 : f32 to vector<8x64xf32>
    %134 = arith.addf %133, %132 : vector<8x64xf32>
    %135 = arith.divf %133, %134 : vector<8x64xf32>
    %136 = vector.extract_strided_slice %123 {offsets = [0, 128], sizes = [8, 64], strides = [1, 1]} : vector<8x256xf32> to vector<8x64xf32>
    %137 = math.tanh %136 : vector<8x64xf32>
    %138 = vector.extract_strided_slice %123 {offsets = [0, 192], sizes = [8, 64], strides = [1, 1]} : vector<8x256xf32> to vector<8x64xf32>
    %139 = arith.negf %138 : vector<8x64xf32>
    %140 = math.exp %139 : vector<8x64xf32>
    %cst_38 = arith.constant 1.000000e+00 : f32
    %141 = vector.broadcast %cst_38 : f32 to vector<8x64xf32>
    %142 = arith.addf %141, %140 : vector<8x64xf32>
    %143 = arith.divf %141, %142 : vector<8x64xf32>
    %144 = arith.mulf %135, %118 : vector<8x64xf32>
    %145 = arith.mulf %129, %137 : vector<8x64xf32>
    %146 = arith.addf %144, %145 : vector<8x64xf32>
    %147 = math.tanh %146 : vector<8x64xf32>
    %148 = arith.mulf %143, %147 : vector<8x64xf32>
    %149 = vector.extract_strided_slice %34 {offsets = [32, 0], sizes = [8, 256], strides = [1, 1]} : vector<64x256xf32> to vector<8x256xf32>
    %cst_39 = arith.constant dense<0.000000e+00> : vector<8x256xf32>
    %150 = tpu.matmul %148, %30, %cst_39 {dimension_numbers = #tpu.dot_dimension_numbers<[1], [0], [0], [1], [0, 0, 1, 1], [], []>} : vector<8x64xf32>, vector<64x256xf32>, vector<8x256xf32> -> vector<8x256xf32>
    %151 = arith.addf %149, %150 : vector<8x256xf32>
    %152 = vector.extract_strided_slice %151 {offsets = [0, 0], sizes = [8, 64], strides = [1, 1]} : vector<8x256xf32> to vector<8x64xf32>
    %153 = arith.negf %152 : vector<8x64xf32>
    %154 = math.exp %153 : vector<8x64xf32>
    %cst_40 = arith.constant 1.000000e+00 : f32
    %155 = vector.broadcast %cst_40 : f32 to vector<8x64xf32>
    %156 = arith.addf %155, %154 : vector<8x64xf32>
    %157 = arith.divf %155, %156 : vector<8x64xf32>
    %158 = vector.extract_strided_slice %151 {offsets = [0, 64], sizes = [8, 64], strides = [1, 1]} : vector<8x256xf32> to vector<8x64xf32>
    %159 = arith.negf %158 : vector<8x64xf32>
    %160 = math.exp %159 : vector<8x64xf32>
    %cst_41 = arith.constant 1.000000e+00 : f32
    %161 = vector.broadcast %cst_41 : f32 to vector<8x64xf32>
    %162 = arith.addf %161, %160 : vector<8x64xf32>
    %163 = arith.divf %161, %162 : vector<8x64xf32>
    %164 = vector.extract_strided_slice %151 {offsets = [0, 128], sizes = [8, 64], strides = [1, 1]} : vector<8x256xf32> to vector<8x64xf32>
    %165 = math.tanh %164 : vector<8x64xf32>
    %166 = vector.extract_strided_slice %151 {offsets = [0, 192], sizes = [8, 64], strides = [1, 1]} : vector<8x256xf32> to vector<8x64xf32>
    %167 = arith.negf %166 : vector<8x64xf32>
    %168 = math.exp %167 : vector<8x64xf32>
    %cst_42 = arith.constant 1.000000e+00 : f32
    %169 = vector.broadcast %cst_42 : f32 to vector<8x64xf32>
    %170 = arith.addf %169, %168 : vector<8x64xf32>
    %171 = arith.divf %169, %170 : vector<8x64xf32>
    %172 = arith.mulf %163, %146 : vector<8x64xf32>
    %173 = arith.mulf %157, %165 : vector<8x64xf32>
    %174 = arith.addf %172, %173 : vector<8x64xf32>
    %175 = math.tanh %174 : vector<8x64xf32>
    %176 = arith.mulf %171, %175 : vector<8x64xf32>
    %177 = vector.extract_strided_slice %34 {offsets = [40, 0], sizes = [8, 256], strides = [1, 1]} : vector<64x256xf32> to vector<8x256xf32>
    %cst_43 = arith.constant dense<0.000000e+00> : vector<8x256xf32>
    %178 = tpu.matmul %176, %30, %cst_43 {dimension_numbers = #tpu.dot_dimension_numbers<[1], [0], [0], [1], [0, 0, 1, 1], [], []>} : vector<8x64xf32>, vector<64x256xf32>, vector<8x256xf32> -> vector<8x256xf32>
    %179 = arith.addf %177, %178 : vector<8x256xf32>
    %180 = vector.extract_strided_slice %179 {offsets = [0, 0], sizes = [8, 64], strides = [1, 1]} : vector<8x256xf32> to vector<8x64xf32>
    %181 = arith.negf %180 : vector<8x64xf32>
    %182 = math.exp %181 : vector<8x64xf32>
    %cst_44 = arith.constant 1.000000e+00 : f32
    %183 = vector.broadcast %cst_44 : f32 to vector<8x64xf32>
    %184 = arith.addf %183, %182 : vector<8x64xf32>
    %185 = arith.divf %183, %184 : vector<8x64xf32>
    %186 = vector.extract_strided_slice %179 {offsets = [0, 64], sizes = [8, 64], strides = [1, 1]} : vector<8x256xf32> to vector<8x64xf32>
    %187 = arith.negf %186 : vector<8x64xf32>
    %188 = math.exp %187 : vector<8x64xf32>
    %cst_45 = arith.constant 1.000000e+00 : f32
    %189 = vector.broadcast %cst_45 : f32 to vector<8x64xf32>
    %190 = arith.addf %189, %188 : vector<8x64xf32>
    %191 = arith.divf %189, %190 : vector<8x64xf32>
    %192 = vector.extract_strided_slice %179 {offsets = [0, 128], sizes = [8, 64], strides = [1, 1]} : vector<8x256xf32> to vector<8x64xf32>
    %193 = math.tanh %192 : vector<8x64xf32>
    %194 = vector.extract_strided_slice %179 {offsets = [0, 192], sizes = [8, 64], strides = [1, 1]} : vector<8x256xf32> to vector<8x64xf32>
    %195 = arith.negf %194 : vector<8x64xf32>
    %196 = math.exp %195 : vector<8x64xf32>
    %cst_46 = arith.constant 1.000000e+00 : f32
    %197 = vector.broadcast %cst_46 : f32 to vector<8x64xf32>
    %198 = arith.addf %197, %196 : vector<8x64xf32>
    %199 = arith.divf %197, %198 : vector<8x64xf32>
    %200 = arith.mulf %191, %174 : vector<8x64xf32>
    %201 = arith.mulf %185, %193 : vector<8x64xf32>
    %202 = arith.addf %200, %201 : vector<8x64xf32>
    %203 = math.tanh %202 : vector<8x64xf32>
    %204 = arith.mulf %199, %203 : vector<8x64xf32>
    %205 = vector.extract_strided_slice %34 {offsets = [48, 0], sizes = [8, 256], strides = [1, 1]} : vector<64x256xf32> to vector<8x256xf32>
    %cst_47 = arith.constant dense<0.000000e+00> : vector<8x256xf32>
    %206 = tpu.matmul %204, %30, %cst_47 {dimension_numbers = #tpu.dot_dimension_numbers<[1], [0], [0], [1], [0, 0, 1, 1], [], []>} : vector<8x64xf32>, vector<64x256xf32>, vector<8x256xf32> -> vector<8x256xf32>
    %207 = arith.addf %205, %206 : vector<8x256xf32>
    %208 = vector.extract_strided_slice %207 {offsets = [0, 0], sizes = [8, 64], strides = [1, 1]} : vector<8x256xf32> to vector<8x64xf32>
    %209 = arith.negf %208 : vector<8x64xf32>
    %210 = math.exp %209 : vector<8x64xf32>
    %cst_48 = arith.constant 1.000000e+00 : f32
    %211 = vector.broadcast %cst_48 : f32 to vector<8x64xf32>
    %212 = arith.addf %211, %210 : vector<8x64xf32>
    %213 = arith.divf %211, %212 : vector<8x64xf32>
    %214 = vector.extract_strided_slice %207 {offsets = [0, 64], sizes = [8, 64], strides = [1, 1]} : vector<8x256xf32> to vector<8x64xf32>
    %215 = arith.negf %214 : vector<8x64xf32>
    %216 = math.exp %215 : vector<8x64xf32>
    %cst_49 = arith.constant 1.000000e+00 : f32
    %217 = vector.broadcast %cst_49 : f32 to vector<8x64xf32>
    %218 = arith.addf %217, %216 : vector<8x64xf32>
    %219 = arith.divf %217, %218 : vector<8x64xf32>
    %220 = vector.extract_strided_slice %207 {offsets = [0, 128], sizes = [8, 64], strides = [1, 1]} : vector<8x256xf32> to vector<8x64xf32>
    %221 = math.tanh %220 : vector<8x64xf32>
    %222 = vector.extract_strided_slice %207 {offsets = [0, 192], sizes = [8, 64], strides = [1, 1]} : vector<8x256xf32> to vector<8x64xf32>
    %223 = arith.negf %222 : vector<8x64xf32>
    %224 = math.exp %223 : vector<8x64xf32>
    %cst_50 = arith.constant 1.000000e+00 : f32
    %225 = vector.broadcast %cst_50 : f32 to vector<8x64xf32>
    %226 = arith.addf %225, %224 : vector<8x64xf32>
    %227 = arith.divf %225, %226 : vector<8x64xf32>
    %228 = arith.mulf %219, %202 : vector<8x64xf32>
    %229 = arith.mulf %213, %221 : vector<8x64xf32>
    %230 = arith.addf %228, %229 : vector<8x64xf32>
    %231 = math.tanh %230 : vector<8x64xf32>
    %232 = arith.mulf %227, %231 : vector<8x64xf32>
    %233 = vector.extract_strided_slice %34 {offsets = [56, 0], sizes = [8, 256], strides = [1, 1]} : vector<64x256xf32> to vector<8x256xf32>
    %cst_51 = arith.constant dense<0.000000e+00> : vector<8x256xf32>
    %234 = tpu.matmul %232, %30, %cst_51 {dimension_numbers = #tpu.dot_dimension_numbers<[1], [0], [0], [1], [0, 0, 1, 1], [], []>} : vector<8x64xf32>, vector<64x256xf32>, vector<8x256xf32> -> vector<8x256xf32>
    %235 = arith.addf %233, %234 : vector<8x256xf32>
    %236 = vector.extract_strided_slice %235 {offsets = [0, 0], sizes = [8, 64], strides = [1, 1]} : vector<8x256xf32> to vector<8x64xf32>
    %237 = arith.negf %236 : vector<8x64xf32>
    %238 = math.exp %237 : vector<8x64xf32>
    %cst_52 = arith.constant 1.000000e+00 : f32
    %239 = vector.broadcast %cst_52 : f32 to vector<8x64xf32>
    %240 = arith.addf %239, %238 : vector<8x64xf32>
    %241 = arith.divf %239, %240 : vector<8x64xf32>
    %242 = vector.extract_strided_slice %235 {offsets = [0, 64], sizes = [8, 64], strides = [1, 1]} : vector<8x256xf32> to vector<8x64xf32>
    %243 = arith.negf %242 : vector<8x64xf32>
    %244 = math.exp %243 : vector<8x64xf32>
    %cst_53 = arith.constant 1.000000e+00 : f32
    %245 = vector.broadcast %cst_53 : f32 to vector<8x64xf32>
    %246 = arith.addf %245, %244 : vector<8x64xf32>
    %247 = arith.divf %245, %246 : vector<8x64xf32>
    %248 = vector.extract_strided_slice %235 {offsets = [0, 128], sizes = [8, 64], strides = [1, 1]} : vector<8x256xf32> to vector<8x64xf32>
    %249 = math.tanh %248 : vector<8x64xf32>
    %250 = vector.extract_strided_slice %235 {offsets = [0, 192], sizes = [8, 64], strides = [1, 1]} : vector<8x256xf32> to vector<8x64xf32>
    %251 = arith.negf %250 : vector<8x64xf32>
    %252 = math.exp %251 : vector<8x64xf32>
    %cst_54 = arith.constant 1.000000e+00 : f32
    %253 = vector.broadcast %cst_54 : f32 to vector<8x64xf32>
    %254 = arith.addf %253, %252 : vector<8x64xf32>
    %255 = arith.divf %253, %254 : vector<8x64xf32>
    %256 = arith.mulf %247, %230 : vector<8x64xf32>
    %257 = arith.mulf %241, %249 : vector<8x64xf32>
    %258 = arith.addf %256, %257 : vector<8x64xf32>
    %259 = math.tanh %258 : vector<8x64xf32>
    %260 = arith.mulf %255, %259 : vector<8x64xf32>
    %c512 = arith.constant 512 : index
    %c0_55 = arith.constant 0 : index
    %261 = vector.load %arg5[%c512, %c0_55] : memref<520x256xf32, #tpu.memory_space<vmem>>, vector<8x8xf32>
    %c0_56 = arith.constant 0 : index
    %c0_57 = arith.constant 0 : index
    %262 = vector.load %arg4[%c0_56, %c0_57] : memref<8x16xf32, #tpu.memory_space<vmem>>, vector<8x16xf32>
    %c264 = arith.constant 264 : index
    %c0_58 = arith.constant 0 : index
    %263 = vector.load %arg5[%c264, %c0_58] : memref<520x256xf32, #tpu.memory_space<vmem>>, vector<16x32xf32>
    %cst_59 = arith.constant dense<0.000000e+00> : vector<8x32xf32>
    %264 = tpu.matmul %262, %263, %cst_59 {dimension_numbers = #tpu.dot_dimension_numbers<[1], [0], [0], [1], [0, 0, 1, 1], [], []>} : vector<8x16xf32>, vector<16x32xf32>, vector<8x32xf32> -> vector<8x32xf32>
    %cst_60 = arith.constant dense<0.000000e+00> : vector<8x32xf32>
    %265 = tpu.matmul %261, %264, %cst_60 {dimension_numbers = #tpu.dot_dimension_numbers<[1], [0], [0], [1], [0, 0, 1, 1], [], []>} : vector<8x8xf32>, vector<8x32xf32>, vector<8x32xf32> -> vector<8x32xf32>
    %c2 = arith.constant 2 : index
    %c0_61 = arith.constant 0 : index
    %266 = vector.load %arg6[%c2, %c0_61] : memref<8x256xf32, #tpu.memory_space<vmem>>, vector<1x32xf32>
    %267 = vector.broadcast %266 : vector<1x32xf32> to vector<8x32xf32>
    %268 = arith.addf %265, %267 : vector<8x32xf32>
    %cst_62 = arith.constant 0.000000e+00 : f32
    %269 = vector.broadcast %cst_62 : f32 to vector<8x32xf32>
    %270 = arith.maximumf %268, %269 : vector<8x32xf32>
    %c280 = arith.constant 280 : index
    %c0_63 = arith.constant 0 : index
    %271 = vector.load %arg5[%c280, %c0_63] : memref<520x256xf32, #tpu.memory_space<vmem>>, vector<32x32xf32>
    %cst_64 = arith.constant dense<0.000000e+00> : vector<8x32xf32>
    %272 = tpu.matmul %270, %271, %cst_64 {dimension_numbers = #tpu.dot_dimension_numbers<[1], [0], [0], [1], [0, 0, 1, 1], [], []>} : vector<8x32xf32>, vector<32x32xf32>, vector<8x32xf32> -> vector<8x32xf32>
    %cst_65 = arith.constant dense<0.000000e+00> : vector<8x32xf32>
    %273 = tpu.matmul %261, %272, %cst_65 {dimension_numbers = #tpu.dot_dimension_numbers<[1], [0], [0], [1], [0, 0, 1, 1], [], []>} : vector<8x8xf32>, vector<8x32xf32>, vector<8x32xf32> -> vector<8x32xf32>
    %c3 = arith.constant 3 : index
    %c0_66 = arith.constant 0 : index
    %274 = vector.load %arg6[%c3, %c0_66] : memref<8x256xf32, #tpu.memory_space<vmem>>, vector<1x32xf32>
    %275 = vector.broadcast %274 : vector<1x32xf32> to vector<8x32xf32>
    %276 = arith.addf %273, %275 : vector<8x32xf32>
    %cst_67 = arith.constant 0.000000e+00 : f32
    %277 = vector.broadcast %cst_67 : f32 to vector<8x32xf32>
    %278 = arith.maximumf %276, %277 : vector<8x32xf32>
    %279 = tpu.iota {dimensions = array<i32: 0>} : vector<2x8xi32>
    %280 = tpu.iota {dimensions = array<i32: 1>} : vector<2x8xi32>
    %c0_i32 = arith.constant 0 : i32
    %281 = vector.broadcast %c0_i32 : i32 to vector<2x8xi32>
    %c0_i32_68 = arith.constant 0 : i32
    %282 = vector.broadcast %c0_i32_68 : i32 to vector<2x8xi32>
    %283 = arith.cmpi eq, %279, %282 : vector<2x8xi32>
    %c0_69 = arith.constant 0 : index
    %284 = memref.load %arg1[%c0_69] : memref<2xi32, #tpu.memory_space<smem>>
    %285 = vector.broadcast %284 : i32 to vector<2x8xi32>
    %286 = arith.select %283, %285, %281 : vector<2x8xi1>, vector<2x8xi32>
    %c1_i32 = arith.constant 1 : i32
    %287 = vector.broadcast %c1_i32 : i32 to vector<2x8xi32>
    %288 = arith.cmpi eq, %279, %287 : vector<2x8xi32>
    %c1_70 = arith.constant 1 : index
    %289 = memref.load %arg1[%c1_70] : memref<2xi32, #tpu.memory_space<smem>>
    %290 = vector.broadcast %289 : i32 to vector<2x8xi32>
    %291 = arith.select %288, %290, %286 : vector<2x8xi1>, vector<2x8xi32>
    %292 = arith.cmpi eq, %280, %291 : vector<2x8xi32>
    %293 = arith.extui %292 : vector<2x8xi1> to vector<2x8xi32>
    %294 = arith.sitofp %293 : vector<2x8xi32> to vector<2x8xf32>
    %cst_71 = arith.constant dense<0.000000e+00> : vector<2x32xf32>
    %295 = tpu.matmul %294, %278, %cst_71 {dimension_numbers = #tpu.dot_dimension_numbers<[1], [0], [0], [1], [0, 0, 1, 1], [], []>} : vector<2x8xf32>, vector<8x32xf32>, vector<2x32xf32> -> vector<2x32xf32>
    %c0_72 = arith.constant 0 : index
    %c0_73 = arith.constant 0 : index
    %296 = vector.load %arg3[%c0_72, %c0_73] : memref<2x8xf32, #tpu.memory_space<vmem>>, vector<2x8xf32>
    %c312 = arith.constant 312 : index
    %c0_74 = arith.constant 0 : index
    %297 = vector.load %arg5[%c312, %c0_74] : memref<520x256xf32, #tpu.memory_space<vmem>>, vector<8x32xf32>
    %cst_75 = arith.constant dense<0.000000e+00> : vector<2x32xf32>
    %298 = tpu.matmul %296, %297, %cst_75 {dimension_numbers = #tpu.dot_dimension_numbers<[1], [0], [0], [1], [0, 0, 1, 1], [], []>} : vector<2x8xf32>, vector<8x32xf32>, vector<2x32xf32> -> vector<2x32xf32>
    %c4 = arith.constant 4 : index
    %c0_76 = arith.constant 0 : index
    %299 = vector.load %arg6[%c4, %c0_76] : memref<8x256xf32, #tpu.memory_space<vmem>>, vector<1x32xf32>
    %300 = vector.broadcast %299 : vector<1x32xf32> to vector<2x32xf32>
    %301 = arith.addf %298, %300 : vector<2x32xf32>
    %cst_77 = arith.constant 0.000000e+00 : f32
    %302 = vector.broadcast %cst_77 : f32 to vector<2x32xf32>
    %303 = arith.maximumf %301, %302 : vector<2x32xf32>
    %304 = vector.extract_strided_slice %260 {offsets = [0, 0], sizes = [2, 64], strides = [1, 1]} : vector<8x64xf32> to vector<2x64xf32>
    %c320 = arith.constant 320 : index
    %c0_78 = arith.constant 0 : index
    %305 = vector.load %arg5[%c320, %c0_78] : memref<520x256xf32, #tpu.memory_space<vmem>>, vector<64x64xf32>
    %cst_79 = arith.constant dense<0.000000e+00> : vector<2x64xf32>
    %306 = tpu.matmul %304, %305, %cst_79 {dimension_numbers = #tpu.dot_dimension_numbers<[1], [0], [0], [1], [0, 0, 1, 1], [], []>} : vector<2x64xf32>, vector<64x64xf32>, vector<2x64xf32> -> vector<2x64xf32>
    %c384 = arith.constant 384 : index
    %c0_80 = arith.constant 0 : index
    %307 = vector.load %arg5[%c384, %c0_80] : memref<520x256xf32, #tpu.memory_space<vmem>>, vector<32x64xf32>
    %cst_81 = arith.constant dense<0.000000e+00> : vector<2x64xf32>
    %308 = tpu.matmul %295, %307, %cst_81 {dimension_numbers = #tpu.dot_dimension_numbers<[1], [0], [0], [1], [0, 0, 1, 1], [], []>} : vector<2x32xf32>, vector<32x64xf32>, vector<2x64xf32> -> vector<2x64xf32>
    %309 = arith.addf %306, %308 : vector<2x64xf32>
    %c416 = arith.constant 416 : index
    %c0_82 = arith.constant 0 : index
    %310 = vector.load %arg5[%c416, %c0_82] : memref<520x256xf32, #tpu.memory_space<vmem>>, vector<32x64xf32>
    %cst_83 = arith.constant dense<0.000000e+00> : vector<2x64xf32>
    %311 = tpu.matmul %303, %310, %cst_83 {dimension_numbers = #tpu.dot_dimension_numbers<[1], [0], [0], [1], [0, 0, 1, 1], [], []>} : vector<2x32xf32>, vector<32x64xf32>, vector<2x64xf32> -> vector<2x64xf32>
    %312 = arith.addf %309, %311 : vector<2x64xf32>
    %c5 = arith.constant 5 : index
    %c0_84 = arith.constant 0 : index
    %313 = vector.load %arg6[%c5, %c0_84] : memref<8x256xf32, #tpu.memory_space<vmem>>, vector<1x64xf32>
    %314 = vector.broadcast %313 : vector<1x64xf32> to vector<2x64xf32>
    %315 = arith.addf %312, %314 : vector<2x64xf32>
    %cst_85 = arith.constant 0.000000e+00 : f32
    %316 = vector.broadcast %cst_85 : f32 to vector<2x64xf32>
    %317 = arith.maximumf %315, %316 : vector<2x64xf32>
    %c448 = arith.constant 448 : index
    %c0_86 = arith.constant 0 : index
    %318 = vector.load %arg5[%c448, %c0_86] : memref<520x256xf32, #tpu.memory_space<vmem>>, vector<64x1xf32>
    %cst_87 = arith.constant dense<0.000000e+00> : vector<2x1xf32>
    %319 = tpu.matmul %317, %318, %cst_87 {dimension_numbers = #tpu.dot_dimension_numbers<[1], [0], [0], [1], [0, 0, 1, 1], [], []>} : vector<2x64xf32>, vector<64x1xf32>, vector<2x1xf32> -> vector<2x1xf32>
    %c6 = arith.constant 6 : index
    %c0_88 = arith.constant 0 : index
    %320 = vector.load %arg6[%c6, %c0_88] : memref<8x256xf32, #tpu.memory_space<vmem>>, vector<1x1xf32>
    %321 = vector.broadcast %320 : vector<1x1xf32> to vector<2x1xf32>
    %322 = arith.addf %319, %321 : vector<2x1xf32>
    %c0_89 = arith.constant 0 : index
    %c0_90 = arith.constant 0 : index
    %323 = vector.load %arg7[%c0_89, %c0_90] : memref<2x1xf32, #tpu.memory_space<vmem>>, vector<2x1xf32>
    tpu.vector_store %arg7[%c0_89, %c0_90], %322 {strides = array<i32>} : memref<2x1xf32, #tpu.memory_space<vmem>>, vector<2x1xf32>,
    return
  }
  func.func @transform_0(%arg0: i32, %arg1: memref<2xi32, #tpu.memory_space<smem>>) -> (i32, i32) {
    %c0_i32 = arith.constant 0 : i32
    %c0_i32_0 = arith.constant 0 : i32
    %c0_i32_1 = arith.constant 0 : i32
    return %c0_i32, %c0_i32_0 : i32, i32
  }
  func.func @transform_1(%arg0: i32, %arg1: memref<2xi32, #tpu.memory_space<smem>>) -> (i32, i32) {
    %c0_i32 = arith.constant 0 : i32
    %c0_i32_0 = arith.constant 0 : i32
    %c0_i32_1 = arith.constant 0 : i32
    return %c0_i32, %c0_i32_0 : i32, i32
  }
  func.func @transform_2(%arg0: i32, %arg1: memref<2xi32, #tpu.memory_space<smem>>) -> (i32, i32) {
    %c0_i32 = arith.constant 0 : i32
    %c0_i32_0 = arith.constant 0 : i32
    %c0_i32_1 = arith.constant 0 : i32
    return %c0_i32, %c0_i32_0 : i32, i32
  }
  func.func @transform_3(%arg0: i32, %arg1: memref<2xi32, #tpu.memory_space<smem>>) -> (i32, i32) {
    %c0_i32 = arith.constant 0 : i32
    %c0_i32_0 = arith.constant 0 : i32
    %c0_i32_1 = arith.constant 0 : i32
    return %c0_i32, %c0_i32_0 : i32, i32
  }
  func.func @transform_4(%arg0: i32, %arg1: memref<2xi32, #tpu.memory_space<smem>>) -> (i32, i32) {
    %c0_i32 = arith.constant 0 : i32
    %c0_i32_0 = arith.constant 0 : i32
    %c0_i32_1 = arith.constant 0 : i32
    return %c0_i32, %c0_i32_0 : i32, i32
  }
  func.func @transform_5(%arg0: i32, %arg1: memref<2xi32, #tpu.memory_space<smem>>) -> (i32, i32) {
    %c0_i32 = arith.constant 0 : i32
    %c0_i32_0 = arith.constant 0 : i32
    %c0_i32_1 = arith.constant 0 : i32
    return %c0_i32, %c0_i32_0 : i32, i32
  }
}

</mosaic_0001>

<bundles_post_ra>
// kernel: hybrid_forward.1
= control target key start
LH: loop header
LB: loop body
LE: loop exit
PB: predicated region body
PF: predicated region fallthrough
CT: control target
= control target key end

     0   :  { %s3665_s0 = inlined_call_operand.vmem [shape: s32[2], index: 0, kind: input, shape index: {}]   ;;  %s3666_s1 = inlined_call_operand.vmem [shape: f32[16,4], index: 1, kind: input, shape index: {}]   ;;  %s3667_s2 = inlined_call_operand.vmem [shape: f32[2,8], index: 2, kind: input, shape index: {}]   ;;  %s3668_s3 = inlined_call_operand.vmem [shape: f32[8,16], index: 3, kind: input, shape index: {}]   ;;  %s3669_s4 = inlined_call_operand.hbm [shape: f32[520,256], index: 4, kind: input, shape index: {}]   ;;  %s3670_s5 = inlined_call_operand.vmem [shape: f32[8,256], index: 5, kind: input, shape index: {}]   ;;  %s3671_s6 = inlined_call_operand.vmem [shape: f32[2,1], index: 6, kind: output, shape index: {}]  }
   0x1   :  { %s11_s23 = sshll.u32 %s3665_s0, 4  ;;  %s12_s23 = int_to_ptr.vmem [resolvable:$true] %s11_s23 }
   0x2   :  { %s3117_s24 = scalar_lea.vmem %s12_s23, 16  ;;  %p3122_p1 = scmp.lt.s32.totalorder %s12_s23, %s12_s23 }
   0x3   :  { %p3118_p0 = scmp.ne.s32.totalorder %s12_s23, %s3117_s24  ;;  %p3123_p2 = scmp.lt.s32.totalorder %s3117_s24, %s3117_s24 }
   0x5   :  { %p3124_p3 = por %p3123_p2, %p3122_p1 }
   0x7   :  { %p3125_p4 = pnand %p3124_p3, %p3118_p0 }
   0x9   :  { %3128 = shalt.err (!%p3125_p4)  }
   0xa   :  { %s3153_s25 = smov [#allocation3]  }
   0xb   :  { %14 = dma.vmem_to_smem %s12_s23, 16, %s3153_s25, [#allocation2] }
   0xc   :  { %3149 = dma.done.wait [#allocation2], 16 }
   0xd   :  { %3150 = vsyncadd [#allocation2], 4294967280 }
   0xe   :  { %16 = sfence }
   0xf   :  { %17 = vsyncpa [#allocation5], 0  ;;  %s3154_s26 = smov [#allocation4]  }
  0x10   :  { %s29_s27 = sshll.u32 %s3154_s26, 4  ;;  %s30_s27 = int_to_ptr.vmem [resolvable:$true] %s29_s27 }
  0x11   :  { %s3137_s28 = scalar_lea.vmem %s30_s27, 16640  ;;  %p3142_p6 = scmp.lt.s32.totalorder %s30_s27, %s30_s27 }
  0x12   :  { %p3138_p5 = scmp.ne.s32.totalorder %s30_s27, %s3137_s28  ;;  %p3143_p7 = scmp.lt.s32.totalorder %s3137_s28, %s3137_s28 }
  0x14   :  { %p3144_p8 = por %p3143_p7, %p3142_p6 }
  0x16   :  { %p3145_p9 = pnand %p3144_p8, %p3138_p5 }
  0x18   :  { %3148 = shalt.err (!%p3145_p9)
}
  0x19   :  { %s3155_s0 = smov 256   ;;  %s3156_s29 = smov 16  }
  0x1a   :  { %35 = dma.hbm_to_vmem [thread:$0]  %s3669_s4, 16640, %s30_s27, [#allocation5], %s3155_s0, %s3155_s0, %s3156_s29  }
  0x1b   :  { %3151 = dma.done.wait [#allocation5], 16640  }
  0x1c   :  { %3152 = vsyncadd [#allocation5], 4294950656  ;;  %vm55_vm0 = vcmask 130048   ;;  %v54_v0 = vld [vmem:[%s3666_s1 + $0x8] sm:$0xff]  ;;  %v53_v1 = vld [vmem:[%s3666_s1] sm:$0xff]  ;;  %vm244_vm1 = vcmask 1043456  }
  0x1d   :  { %v41_v2 = vld [vmem:[#allocation4] sm:$0xff]  ;;  %2824 = vmatprep.subr.mxu0 %v54_v0  ;;  %v42_v3 = vld [vmem:[#allocation4 + $0x10] sm:$0xff]  ;;  %vm219_vm2 = vcmask 31744   ;;  %v856_v31 = vld [vmem:[#allocation4 + $0x188] sm:$0xff]  ;;  %v3157_v63 = vmov 0.0   ;;  %vm886_vm3 = vcmask 523264  }
  0x1e   :  { %2828 = vmatprep.mubr.msk.f32.mxu0 %vm55_vm0, %v41_v2  ;;  %2825 = vmatpush3.msra.mxu0 %v54_v0  ;;  %v43_v4 = vld [vmem:[#allocation4 + $0x20] sm:$0xff]  ;;  %v44_v5 = vld [vmem:[#allocation4 + $0x30] sm:$0xff]  ;;  %v3269_v32 = vld [vmem:[#allocation4 + $0x208] sm:$0xff]  ;;  %s3158_s14 = smov 64   ;;  %vm3159_vm4 = vmmov 0   ;;  %vm1900_vm5 = vcmask 64512  }
  0x1f   :  { %2826 = vmatprep.subr.mxu0 %v53_v1  ;;  %v45_v6 = vld [vmem:[#allocation4 + $0x40] sm:$0xff]  ;;  %v46_v7 = vld [vmem:[#allocation4 + $0x50] sm:$0xff]  ;;  %v854_v35 = vld [vmem:[#allocation4 + $0x178] sm:$0xff]  ;;  %vm1979_vm6 = vcmask 261120   ;;  %s2713_s20 = sld [smem:[#allocation3 + $0x1]]  ;;  %vm2613_vm10 = vcmask 1024  }
  0x20   :  { %2827 = vmatpush3.msra.mxu0 %v53_v1  ;;  %v47_v8 = vld [vmem:[#allocation4 + $0x60] sm:$0xff]  ;;  %v48_v9 = vld [vmem:[#allocation4 + $0x70] sm:$0xff]  ;;  %v3275_v36 = vld [vmem:[#allocation4 + $0x1f8] sm:$0xff] }
  0x21   :  { %2829 = vmatmul.mubr.msk.f32.vlgmr.msra.gmra.mxu0 %vm55_vm0, %v42_v3  ;;  %v49_v10 = vld [vmem:[#allocation4 + $0x80] sm:$0xff]  ;;  %v50_v11 = vld [vmem:[#allocation4 + $0x90] sm:$0xff]  ;;  %v852_v39 = vld [vmem:[#allocation4 + $0x168] sm:$0xff] }
  0x22   :  { %2831 = vmatprep.mubr.msk.f32.mxu0 %vm55_vm0, %v43_v4  ;;  %v51_v12 = vld [vmem:[#allocation4 + $0xa0] sm:$0xff]  ;;  %v52_v13 = vld [vmem:[#allocation4 + $0xb0] sm:$0xff]  ;;  %v3281_v40 = vld [vmem:[#allocation4 + $0x1e8] sm:$0xff] }
  0x23   :  { %v464_v14 = vld [vmem:[#allocation4 + $0xe0] sm:$0xf]  ;;  %v218_v15 = vld [vmem:[#allocation4 + $0xd0] sm:$0xf]  ;;  %v850_v43 = vld [vmem:[#allocation4 + $0x158] sm:$0xff] }
  0x24   :  { %2874 = vmatprep.subr.msk.mxu0 %vm244_vm1, %v464_v14  ;;  %2846 = vmatprep.subr.msk.mxu1 %vm244_vm1, %v218_v15  ;;  %v217_v16 = vld [vmem:[#allocation4 + $0xc0] sm:$0xf]  ;;  %v584_v22 = vld [vmem:[#allocation4 + $0xf0] sm:$0xf]  ;;  %v3287_v44 = vld [vmem:[#allocation4 + $0x1d8] sm:$0xff] }
  0x25   :  { %2832 = vmatmul.mubr.msk.f32.gmra.mxu0 %vm55_vm0, %v44_v5  ;;  %2847 = vmatpush3.msk.msra.mxu1 %vm244_vm1, %v218_v15  ;;  %v704_v17 = vld [vmem:[#allocation4 + $0x100] sm:$0xf]  ;;  %v853_v37 = vld [vmem:[#allocation4 + $0x170] sm:$0xff]  ;;  %v848_v47 = vld [vmem:[#allocation4 + $0x148] sm:$0xff] }
  0x26   :  { %2834 = vmatprep.mubr.msk.f32.mxu0 %vm55_vm0, %v45_v6  ;;  %2875 = vmatpush3.msk.msra.mxu0 %vm244_vm1, %v464_v14  ;;  %v855_v33 = vld [vmem:[#allocation4 + $0x180] sm:$0xff]  ;;  %v3278_v38 = vld [vmem:[#allocation4 + $0x1f0] sm:$0xff]  ;;  %v3293_v48 = vld [vmem:[#allocation4 + $0x1c8] sm:$0xff] }
  0x27   :  { %2860 = vmatprep.subr.msk.mxu1 %vm244_vm1, %v217_v16  ;;  %2902 = vmatprep.subr.msk.mxu0 %vm244_vm1, %v704_v17  ;;  %v3272_v34 = vld [vmem:[#allocation4 + $0x200] sm:$0xff]  ;;  %v849_v45 = vld [vmem:[#allocation4 + $0x150] sm:$0xff]  ;;  %v846_v51 = vld [vmem:[#allocation4 + $0x138] sm:$0xff] }
  0x28   :  { %v851_v41 = vld [vmem:[#allocation4 + $0x160] sm:$0xff]  ;;  %v3290_v46 = vld [vmem:[#allocation4 + $0x1d0] sm:$0xff]  ;;  %v3299_v52 = vld [vmem:[#allocation4 + $0x1b8] sm:$0xff] }
  0x29   :  { %2835 = vmatmul.mubr.msk.f32.gmra.mxu0 %vm55_vm0, %v46_v7  ;;  %v3284_v42 = vld [vmem:[#allocation4 + $0x1e0] sm:$0xff]  ;;  %v845_v53 = vld [vmem:[#allocation4 + $0x130] sm:$0xff]  ;;  %v844_v55 = vld [vmem:[#allocation4 + $0x128] sm:$0xff] }
  0x2a   :  { %2837 = vmatprep.mubr.msk.f32.mxu0 %vm55_vm0, %v47_v8  ;;  %v847_v49 = vld [vmem:[#allocation4 + $0x140] sm:$0xff]  ;;  %v3302_v54 = vld [vmem:[#allocation4 + $0x1b0] sm:$0xff]  ;;  %v3305_v56 = vld [vmem:[#allocation4 + $0x1a8] sm:$0xff] }
  0x2b   :  { %v3296_v50 = vld [vmem:[#allocation4 + $0x1c0] sm:$0xff]  ;;  %v842_v59 = vld [vmem:[#allocation4 + $0x118] sm:$0xff]  ;;  %v841_v61 = vld [vmem:[#allocation4 + $0x110] sm:$0xff] }
  0x2c   :  { %v843_v57 = vld [vmem:[#allocation4 + $0x120] sm:$0xff]  ;;  %v3311_v60 = vld [vmem:[#allocation4 + $0x198] sm:$0xff]  ;;  %v3314_v62 = vld [vmem:[#allocation4 + $0x190] sm:$0xff] }
  0x2d   :  { %2838 = vmatmul.mubr.msk.f32.gmra.mxu0 %vm55_vm0, %v48_v9  ;;  %v3308_v58 = vld [vmem:[#allocation4 + $0x1a0] sm:$0xff] }
  0x2e   :  { %2840 = vmatprep.mubr.msk.f32.mxu0 %vm55_vm0, %v49_v10 }
  0x31   :  { %2841 = vmatmul.mubr.msk.f32.gmra.mxu0 %vm55_vm0, %v50_v11 }
  0x32   :  { %2843 = vmatprep.mubr.msk.f32.mxu0 %vm55_vm0, %v51_v12 }
  0x35   :  { %2844 = vmatmul.mubr.msk.f32.gmra.mxu0 %vm55_vm0, %v52_v13 }
  0xe1   :  { %v2830_v18 = vpop.f32.mrf.mxu0 }
  0xe2   :  { %2848 = vmatprep.mubr.msk.f32.mxu1 %vm219_vm2, %v2830_v18 }
  0xe3   :  { %v158_v19 = vpop.f32.mrf.mxu0 }
  0xe5   :  { %v2833_v20 = vpop.f32.mrf.mxu0 }
  0xe7   :  { %v168_v21 = vpop.f32.mrf.mxu0 }
  0xe8   :  { %2849 = vmatmul.mubr.msk.f32.vlgmr.msra.gmra.mxu1 %vm219_vm2, %v168_v21  ;;  %2876 = vmatprep.mubr.msk.f32.mxu0 %vm219_vm2, %v168_v21 }
  0xe9   :  { %v2836_v23 = vpop.f32.mrf.mxu0  ;;  %2851 = vmatprep.mubr.msk.f32.mxu1 %vm219_vm2, %v2833_v20  ;;  %2877 = vmatmul.mubr.msk.f32.vlgmr.msra.gmra.mxu0 %vm219_vm2, %v2833_v20 }
  0xea   :  { %2861 = vmatpush3.msk.msra.mxu1 %vm244_vm1, %v217_v16  ;;  %2903 = vmatpush3.msk.msra.mxu0 %vm244_vm1, %v704_v17 }
  0xeb   :  { %v178_v24 = vpop.f32.mrf.mxu0  ;;  %2888 = vmatprep.subr.msk.mxu1 %vm244_vm1, %v584_v22  ;;  %1043 = vmatprep.subr.mxu0 %v3269_v32 }
  0xec   :  { %2852 = vmatmul.mubr.msk.f32.gmra.mxu1 %vm219_vm2, %v178_v24  ;;  %2879 = vmatprep.mubr.msk.f32.mxu0 %vm219_vm2, %v178_v24 }
  0xed   :  { %v2839_v25 = vpop.f32.mrf.mxu0  ;;  %2854 = vmatprep.mubr.msk.f32.mxu1 %vm219_vm2, %v2836_v23  ;;  %2880 = vmatmul.mubr.msk.f32.gmra.mxu0 %vm219_vm2, %v2836_v23 }
  0xef   :  { %v188_v26 = vpop.f32.mrf.mxu0 }
  0xf0   :  { %2855 = vmatmul.mubr.msk.f32.gmra.mxu1 %vm219_vm2, %v188_v26  ;;  %2882 = vmatprep.mubr.msk.f32.mxu0 %vm219_vm2, %v188_v26 }
  0xf1   :  { %v2842_v27 = vpop.f32.mrf.mxu0  ;;  %2857 = vmatprep.mubr.msk.f32.mxu1 %vm219_vm2, %v2839_v25  ;;  %2883 = vmatmul.mubr.msk.f32.gmra.mxu0 %vm219_vm2, %v2839_v25 }
  0xf3   :  { %v198_v28 = vpop.f32.mrf.mxu0 }
  0xf4   :  { %2858 = vmatmul.mubr.msk.f32.gmra.mxu1 %vm219_vm2, %v198_v28  ;;  %2885 = vmatprep.mubr.msk.f32.mxu0 %vm219_vm2, %v198_v28 }
  0xf5   :  { %2862 = vmatprep.mubr.msk.f32.mxu1 %vm219_vm2, %v158_v19  ;;  %2886 = vmatmul.mubr.msk.f32.gmra.mxu0 %vm219_vm2, %v2842_v27  ;;  %v2845_v29 = vpop.f32.mrf.mxu0 }
  0xf6   :  { %2904 = vmatprep.mubr.msk.f32.mxu0 %vm219_vm2, %v178_v24 }
  0xf7   :  { %v208_v30 = vpop.f32.mrf.mxu0 }
  0xf8   :  { %2863 = vmatmul.mubr.msk.f32.vlgmr.msra.gmra.mxu1 %vm219_vm2, %v2830_v18 }
  0xf9   :  { %2865 = vmatprep.mubr.msk.f32.mxu1 %vm219_vm2, %v168_v21  ;;  %2905 = vmatmul.mubr.msk.f32.vlgmr.msra.gmra.mxu0 %vm219_vm2, %v2836_v23 }
  0xfa   :  { %2907 = vmatprep.mubr.msk.f32.mxu0 %vm219_vm2, %v188_v26  ;;  %2889 = vmatpush3.msk.msra.mxu1 %vm244_vm1, %v584_v22 }
  0xfb   :  { %927 = vmatprep.subr.mxu1 %v856_v31  ;;  %1044 = vmatpush1.msra.mxu0 %v3272_v34 }
  0xfc   :  { %2866 = vmatmul.mubr.msk.f32.gmra.mxu1 %vm219_vm2, %v2833_v20  ;;  %1045 = vmatprep.subr.mxu0 %v3275_v36 }
  0xfd   :  { %2868 = vmatprep.mubr.msk.f32.mxu1 %vm219_vm2, %v178_v24  ;;  %2908 = vmatmul.mubr.msk.f32.gmra.mxu0 %vm219_vm2, %v2839_v25 }
  0xfe   :  { %2910 = vmatprep.mubr.msk.f32.mxu0 %vm219_vm2, %v198_v28  ;;  %1046 = vmatpush1.msra.mxu0 %v3278_v38 }
  0xff   :  { %1047 = vmatprep.subr.mxu0 %v3281_v40 }
 0x100   :  { %2869 = vmatmul.mubr.msk.f32.gmra.mxu1 %vm219_vm2, %v2836_v23  ;;  %1048 = vmatpush1.msra.mxu0 %v3284_v42 }
 0x101   :  { %2871 = vmatprep.mubr.msk.f32.mxu1 %vm219_vm2, %v188_v26  ;;  %2911 = vmatmul.mubr.msk.f32.gmra.mxu0 %vm219_vm2, %v2842_v27 }
 0x102   :  { %2913 = vmatprep.mubr.msk.f32.mxu0 %vm219_vm2, %v208_v30  ;;  %1049 = vmatprep.subr.mxu0 %v3287_v44 }
 0x103   :  { %1050 = vmatpush1.msra.mxu0 %v3290_v46 }
 0x104   :  { %2872 = vmatmul.mubr.msk.f32.gmra.mxu1 %vm219_vm2, %v2839_v25  ;;  %1051 = vmatprep.subr.mxu0 %v3293_v48 }
 0x105   :  { %2890 = vmatprep.mubr.msk.f32.mxu1 %vm219_vm2, %v2833_v20  ;;  %2914 = vmatmul.mubr.msk.f32.gmra.mxu0 %vm219_vm2, %v2845_v29 }
 0x106   :  { %1052 = vmatpush1.msra.mxu0 %v3296_v50  ;;  %1091 = vmatprep.mubr.f32.mxu0 %v3157_v63 }
 0x107   :  { %1053 = vmatprep.subr.mxu0 %v3299_v52 }
 0x108   :  { %2891 = vmatmul.mubr.msk.f32.vlgmr.msra.gmra.mxu1 %vm219_vm2, %v178_v24  ;;  %1054 = vmatpush1.msra.mxu0 %v3302_v54 }
 0x109   :  { %2893 = vmatprep.mubr.msk.f32.mxu1 %vm219_vm2, %v2836_v23  ;;  %928 = vmatpush1.msra.mxu1 %v855_v33 }
 0x10a   :  { %929 = vmatprep.subr.mxu1 %v854_v35  ;;  %1055 = vmatprep.subr.mxu0 %v3305_v56 }
 0x10b   :  { %930 = vmatpush1.msra.mxu1 %v853_v37  ;;  %1056 = vmatpush1.msra.mxu0 %v3308_v58 }
 0x10c   :  { %2894 = vmatmul.mubr.msk.f32.gmra.mxu1 %vm219_vm2, %v188_v26  ;;  %931 = vmatprep.subr.mxu1 %v852_v39 }
 0x10d   :  { %2896 = vmatprep.mubr.msk.f32.mxu1 %vm219_vm2, %v2839_v25  ;;  %932 = vmatpush1.msra.mxu1 %v851_v41 }
 0x10e   :  { %933 = vmatprep.subr.mxu1 %v850_v43  ;;  %1057 = vmatprep.subr.mxu0 %v3311_v60 }
 0x10f   :  { %934 = vmatpush1.msra.mxu1 %v849_v45  ;;  %1058 = vmatpush1.msra.mxu0 %v3314_v62 }
 0x110   :  { %2897 = vmatmul.mubr.msk.f32.gmra.mxu1 %vm219_vm2, %v198_v28  ;;  %935 = vmatprep.subr.mxu1 %v848_v47 }
 0x111   :  { %2899 = vmatprep.mubr.msk.f32.mxu1 %vm219_vm2, %v2842_v27  ;;  %936 = vmatpush1.msra.mxu1 %v847_v49 }
 0x112   :  { %937 = vmatprep.subr.mxu1 %v846_v51  ;;  %1092 = vmatmul.mubr.f32.vlgmr.msra.gmra.mxu0 %v3157_v63  ;;  %v3348_v51 = vld [vmem:[%s3670_s5] ss:$0 sm:$0xff] }
 0x113   :  { %938 = vmatpush1.msra.mxu1 %v845_v53  ;;  %1143 = vmatprep.subr.mxu0 %v3269_v32 }
 0x114   :  { %2900 = vmatmul.mubr.msk.f32.gmra.mxu1 %vm219_vm2, %v208_v30  ;;  %939 = vmatprep.subr.mxu1 %v844_v55 }
 0x115   :  { %940 = vmatpush1.msra.mxu1 %v843_v57  ;;  %975 = vmatprep.mubr.f32.mxu1 %v3157_v63 }
 0x116   :  { %941 = vmatprep.subr.mxu1 %v842_v59  ;;  %1144 = vmatpush1.msra.mxu0 %v3272_v34 }
 0x117   :  { %942 = vmatpush1.msra.mxu1 %v841_v61  ;;  %1191 = vmatprep.mubr.f32.mxu0 %v3157_v63 }
 0x118   :  { %1145 = vmatprep.subr.mxu0 %v3275_v36  ;;  %1243 = vmatprep.subr.mxu1 %v3269_v32 }
 0x119   :  { %1146 = vmatpush1.msra.mxu0 %v3278_v38 }
 0x11a   :  { %1147 = vmatprep.subr.mxu0 %v3281_v40 }
 0x11b   :  { %1148 = vmatpush1.msra.mxu0 %v3284_v42 }
 0x11c   :  { %1149 = vmatprep.subr.mxu0 %v3287_v44 }
 0x11d   :  { %1150 = vmatpush1.msra.mxu0 %v3290_v46 }
 0x11e   :  { %1151 = vmatprep.subr.mxu0 %v3293_v48 }
 0x11f   :  { %1152 = vmatpush1.msra.mxu0 %v3296_v50 }
 0x120   :  { %1153 = vmatprep.subr.mxu0 %v3299_v52 }
 0x121   :  { %1154 = vmatpush1.msra.mxu0 %v3302_v54 }
 0x122   :  { %1155 = vmatprep.subr.mxu0 %v3305_v56 }
 0x123   :  { %1156 = vmatpush1.msra.mxu0 %v3308_v58 }
 0x124   :  { %1157 = vmatprep.subr.mxu0 %v3311_v60 }
 0x125   :  { %1158 = vmatpush1.msra.mxu0 %v3314_v62 }
 0x126   :  { %1343 = vmatprep.subr.mxu0 %v3269_v32 }
 0x1a8   :  { %v2850_v0 = vpop.f32.mrf.mxu1 }
 0x1a9   :  { %v2878_v1 = vpop.f32.mrf.mxu0 }
 0x1aa   :  { %v314_v2 = vpop.f32.mrf.mxu1 }
 0x1ab   :  { %v537_v3 = vpop.f32.mrf.mxu0 }
 0x1ac   :  { %v2853_v4 = vpop.f32.mrf.mxu1 }
 0x1ad   :  { %v2881_v5 = vpop.f32.mrf.mxu0 }
 0x1ae   :  { %v324_v6 = vpop.f32.mrf.mxu1 }
 0x1af   :  { %v547_v7 = vpop.f32.mrf.mxu0 }
 0x1b0   :  { %v2856_v8 = vpop.f32.mrf.mxu1 }
 0x1b1   :  { %v2884_v10 = vpop.f32.mrf.mxu0 }
 0x1b2   :  { %v334_v9 = vpop.f32.mrf.mxu1 }
 0x1b3   :  { %v557_v13 = vpop.f32.mrf.mxu0 }
 0x1b4   :  { %v3339_v11 = vpop.f32.mrf.mxu1 }
 0x1b5   :  { %v3341_v16 = vpop.f32.mrf.mxu0 }
 0x1b6   :  { %v344_v12 = vpop.f32.mrf.mxu1 }
 0x1b7   :  { %v3343_v19 = vpop.f32.mrf.mxu0 }
 0x1b8   :  { %v2864_v14 = vpop.f32.mrf.mxu1 }
 0x1b9   :  { %v431_v22 = vadd.f32 %v2864_v14, %v2850_v0  ;;  %v2906_v23 = vpop.f32.mrf.mxu0 }
 0x1ba   :  { %v425_v15 = vpop.f32.mrf.mxu1 }
 0x1bb   :  { %v426_v25 = vadd.f32 %v425_v15, %v314_v2  ;;  %v577_v27 = vadd.f32 %v2878_v1, %v431_v22  ;;  %v777_v28 = vpop.f32.mrf.mxu0 }
 0x1bc   :  { %v2867_v17 = vpop.f32.mrf.mxu1 }
 0x1bd   :  { %v576_v33 = vadd.f32 %v537_v3, %v426_v25  ;;  %v441_v37 = vadd.f32 %v2867_v17, %v2853_v4  ;;  %v2909_v41 = vpop.f32.mrf.mxu0 }
 0x1be   :  { %v435_v18 = vpop.f32.mrf.mxu1 }
 0x1bf   :  { %v436_v30 = vadd.f32 %v435_v18, %v324_v6  ;;  %v579_v59 = vadd.f32 %v2881_v5, %v441_v37  ;;  %v787_v0 = vpop.f32.mrf.mxu0 }
 0x1c0   :  { %v2870_v20 = vpop.f32.mrf.mxu1 }
 0x1c1   :  { %v578_v49 = vadd.f32 %v547_v7, %v436_v30  ;;  %v451_v14 = vadd.f32 %v2870_v20, %v2856_v8  ;;  %v2912_v17 = vpop.f32.mrf.mxu0 }
 0x1c2   :  { %v445_v21 = vpop.f32.mrf.mxu1 }
 0x1c3   :  { %v446_v55 = vadd.f32 %v445_v21, %v334_v9  ;;  %v581_v8 = vadd.f32 %v2884_v10, %v451_v14 }
 0x1c4   :  { %v2873_v24 = vpop.f32.mrf.mxu1 }
 0x1c5   :  { %v580_v15 = vadd.f32 %v557_v13, %v446_v55  ;;  %v797_v13 = vpop.f32.mrf.mxu0  ;;  %v461_v10 = vadd.f32 %v2873_v24, %v3339_v11  ;;  %v876_v55 = vlaneseq }
 0x1c6   :  { %v455_v26 = vpop.f32.mrf.mxu1 }
 0x1c7   :  { %v2915_v30 = vpop.f32.mrf.mxu0  ;;  %v583_v11 = vadd.f32 %v3341_v16, %v461_v10 }
 0x1c8   :  { %v2892_v29 = vpop.f32.mrf.mxu1 }
 0x1c9   :  { %v697_v31 = vadd.f32 %v2892_v29, %v577_v27  ;;  %v807_v37 = vpop.f32.mrf.mxu0 }
 0x1ca   :  { %v657_v35 = vpop.f32.mrf.mxu1 }
 0x1cb   :  { %v696_v39 = vadd.f32 %v657_v35, %v576_v33  ;;  %v817_v45 = vadd.f32 %v2906_v23, %v697_v31  ;;  %v456_v23 = vadd.f32 %v455_v26, %v344_v12 }
 0x1cc   :  { %v2895_v43 = vpop.f32.mrf.mxu1 }
 0x1cd   :  { %v816_v47 = vadd.f32 %v777_v28, %v696_v39  ;;  %v826_v2 = vadd.f32 %v3348_v51, %v817_v45  ;;  %v699_v4 = vadd.f32 %v2895_v43, %v579_v59  ;;  %v582_v12 = vadd.f32 %v3343_v19, %v456_v23 }
 0x1ce   :  { %v667_v53 = vpop.f32.mrf.mxu1 }
 0x1cf   :  { %v825_v57 = vadd.f32 %v3348_v51, %v816_v47  ;;  %v698_v61 = vadd.f32 %v667_v53, %v578_v49  ;;  %v834_v5 = vmax.f32 %v826_v2, 0.0  ;;  %v819_v9 = vadd.f32 %v2909_v41, %v699_v4 }
 0x1d0   :  { %v2898_v1 = vpop.f32.mrf.mxu1 }
 0x1d1   :  { %v833_v3 = vmax.f32 %v825_v57, 0.0  ;;  %v818_v6 = vadd.f32 %v787_v0, %v698_v61  ;;  %v828_v20 = vadd.f32 %v3348_v51, %v819_v9  ;;  %v701_v27 = vadd.f32 %v2898_v1, %v581_v8 }
 0x1d2   :  { %v677_v7 = vpop.f32.mrf.mxu1  ;;  %v3394_v57 = vshrl.u32 %v876_v55, 7  ;;  %v1093_v2 = vpop.f32.mrf.mxu0 }
 0x1d3   :  { %2678 = vmatmul.mubr.msk.f32.vlgmr.msra.gmra.mxu1 %vm886_vm3, %v833_v3  ;;  %v827_v18 = vadd.f32 %v3348_v51, %v818_v6  ;;  %v700_v21 = vadd.f32 %v677_v7, %v580_v15  ;;  %v836_v26 = vmax.f32 %v828_v20, 0.0  ;;  %v821_v31 = vadd.f32 %v2912_v17, %v701_v27 }
 0x1d4   :  { %981 = vmatprep.mubr.f32.mxu1 %v3157_v63  ;;  %1244 = vmatpush1.msra.mxu1 %v3272_v34  ;;  %v2901_v22 = vpop.f32.mrf.mxu1  ;;  %v878_v59 = vsub.s32 0, %v3394_v57  ;;  %v882_v14 = vsub.s32 1, %v3394_v57  ;;  %v1095_v20 = vpop.f32.mrf.mxu0  ;;  %vm2129_vm7 = vcmp.eq.s32.totalorder %v3394_v57, 0  ;;  %vm2133_vm8 = vcmp.eq.s32.totalorder %v3394_v57, 1 }
 0x1d5   :  { %1245 = vmatprep.subr.mxu1 %v3275_v36  ;;  %v835_v25 = vmax.f32 %v827_v18, 0.0  ;;  %v820_v28 = vadd.f32 %v797_v13, %v700_v21  ;;  %v830_v19 = vadd.f32 %v3348_v51, %v821_v31  ;;  %v703_v39 = vadd.f32 %v2901_v22, %v583_v11 }
 0x1d6   :  { %1246 = vmatpush1.msra.mxu1 %v3278_v38  ;;  %v687_v29 = vpop.f32.mrf.mxu1 }
 0x1d7   :  { %2679 = vmatmul.mubr.msk.f32.gmra.mxu1 %vm886_vm3, %v834_v5  ;;  %1247 = vmatprep.subr.mxu1 %v3281_v40  ;;  %v829_v33 = vadd.f32 %v3348_v51, %v820_v28  ;;  %v702_v35 = vadd.f32 %v687_v29, %v582_v12  ;;  %v838_v16 = vmax.f32 %v830_v19, 0.0  ;;  %v823_v43 = vadd.f32 %v2915_v30, %v703_v39 }
 0x1d8   :  { %987 = vmatprep.mubr.f32.mxu1 %v3157_v63  ;;  %1248 = vmatpush1.msra.mxu1 %v3284_v42 }
 0x1d9   :  { %1249 = vmatprep.subr.mxu1 %v3287_v44  ;;  %v837_v24 = vmax.f32 %v829_v33, 0.0  ;;  %v822_v41 = vadd.f32 %v807_v37, %v702_v35  ;;  %v832_v47 = vadd.f32 %v3348_v51, %v823_v43 }
 0x1da   :  { %1250 = vmatpush1.msra.mxu1 %v3290_v46 }
 0x1db   :  { %2680 = vmatmul.mubr.msk.f32.gmra.mxu1 %vm886_vm3, %v835_v25  ;;  %1251 = vmatprep.subr.mxu1 %v3293_v48  ;;  %v831_v45 = vadd.f32 %v3348_v51, %v822_v41  ;;  %v840_v53 = vmax.f32 %v832_v47, 0.0  ;;  %v2677_v51 = vld [vmem:[%s3670_s5 + $0x1] ss:$8 sm:$0x3] }
 0x1dc   :  { %993 = vmatprep.mubr.f32.mxu1 %v3157_v63  ;;  %1252 = vmatpush1.msra.mxu1 %v3296_v50  ;;  %v3400_v61 = vrot.slane %v2677_v51, %v878_v59  ;;  %v3410_v5 = vrot.slane %v2677_v51, %v882_v14 }
 0x1dd   :  { %1253 = vmatprep.subr.mxu1 %v3299_v52  ;;  %v839_v49 = vmax.f32 %v831_v45, 0.0 }
 0x1de   :  { %1254 = vmatpush1.msra.mxu1 %v3302_v54 }
 0x1df   :  { %2681 = vmatmul.mubr.msk.f32.gmra.mxu1 %vm886_vm3, %v836_v26  ;;  %1255 = vmatprep.subr.mxu1 %v3305_v56 }
 0x1e0   :  { %999 = vmatprep.mubr.f32.mxu1 %v3157_v63  ;;  %1256 = vmatpush1.msra.mxu1 %v3308_v58 }
 0x1e1   :  { %1257 = vmatprep.subr.mxu1 %v3311_v60 }
 0x1e2   :  { %1258 = vmatpush1.msra.mxu1 %v3314_v62 }
 0x1e3   :  { %2682 = vmatmul.mubr.msk.f32.gmra.mxu1 %vm886_vm3, %v837_v24  ;;  %1443 = vmatprep.subr.mxu1 %v3269_v32 }
 0x1e4   :  { %1005 = vmatprep.mubr.f32.mxu1 %v3157_v63 }
 0x1e7   :  { %2683 = vmatmul.mubr.msk.f32.gmra.mxu1 %vm886_vm3, %v838_v16 }
 0x1e8   :  { %1011 = vmatprep.mubr.f32.mxu1 %v3157_v63 }
 0x1eb   :  { %2684 = vmatmul.mubr.msk.f32.gmra.mxu1 %vm886_vm3, %v839_v49 }
 0x1ec   :  { %1017 = vmatprep.mubr.f32.mxu1 %v3157_v63 }
 0x1ef   :  { %2685 = vmatmul.mubr.msk.f32.gmra.mxu1 %vm886_vm3, %v840_v53 }
 0x1f0   :  { %1291 = vmatprep.mubr.f32.mxu1 %v3157_v63 }
 0x293   :  { %v977_v0 = vpop.f32.mrf.mxu1 }
 0x294   :  { %v978_v1 = vadd.f32 %v977_v0, %v3400_v61 }
 0x295   :  { %v979_v3 = vpop.f32.mrf.mxu1 }
 0x296   :  { %v1098_v4 = vadd.f32 %v1093_v2, %v978_v1  ;;  %v980_v22 = vadd.f32 %v979_v3, %v3410_v5 }
 0x297   :  { %v3403_v6 = vpop.f32.mrf.mxu1 }
 0x298   :  { %v2686_v7 = vmul.f32 -1.442695, %v1098_v4  ;;  %v1099_v27 = vadd.f32 %v1095_v20, %v980_v22  ;;  %v984_v4 = vadd.f32 %v3403_v6, %v3400_v61 }
 0x299   :  { %v3406_v15 = vpop.f32.mrf.mxu1 }
 0x29a   :  { %3021 = vpow2.f32 %v2686_v7  ;;  %v2687_v45 = vmul.f32 -1.442695, %v1099_v27 }
 0x29b   :  { %v3408_v17 = vpop.f32.mrf.mxu1  ;;  %3023 = vtanh.f32 %v1099_v27 }
 0x29d   :  { %v3412_v9 = vpop.f32.mrf.mxu1 }
 0x29f   :  { %v995_v18 = vpop.f32.mrf.mxu1 }
 0x2a0   :  { %v3415_v21 = vadd.f32 %v995_v18, %v3400_v61 }
 0x2a1   :  { %v997_v23 = vpop.f32.mrf.mxu1 }
 0x2a2   :  { %v3419_v8 = vadd.f32 %v997_v23, %v3410_v5  ;;  %v986_v23 = vadd.f32 %v3406_v15, %v3410_v5 }
 0x2a3   :  { %v1001_v13 = vpop.f32.mrf.mxu1 }
 0x2a4   :  { %v3422_v25 = vadd.f32 %v1001_v13, %v3400_v61 }
 0x2a5   :  { %v1003_v28 = vpop.f32.mrf.mxu1 }
 0x2a6   :  { %v3425_v29 = vadd.f32 %v1003_v28, %v3410_v5 }
 0x2a7   :  { %v3022_v30 = vpop.eup %3021  ;;  %v1007_v10 = vpop.f32.mrf.mxu1 }
 0x2a8   :  { %v1103_v12 = vadd.f32 1.0, %v3022_v30  ;;  %v3428_v26 = vadd.f32 %v1007_v10, %v3400_v61  ;;  %v3024_v41 = vpop.eup %3023 }
 0x2a9   :  { %v1009_v31 = vpop.f32.mrf.mxu1 }
 0x2aa   :  { %3025 = vrcp.f32 %v1103_v12  ;;  %v3431_v33 = vadd.f32 %v1009_v31, %v3410_v5 }
 0x2ab   :  { %v1013_v35 = vpop.f32.mrf.mxu1  ;;  %3027 = vpow2.f32 %v2687_v45 }
 0x2ac   :  { %v3434_v37 = vadd.f32 %v1013_v35, %v3400_v61 }
 0x2ad   :  { %v1015_v11 = vpop.f32.mrf.mxu1 }
 0x2ae   :  { %v3437_v19 = vadd.f32 %v1015_v11, %v3410_v5 }
 0x2af   :  { %v1019_v24 = vpop.f32.mrf.mxu1 }
 0x2b0   :  { %v3440_v39 = vadd.f32 %v1019_v24, %v3400_v61 }
 0x2b1   :  { %v3486_v45 = vpop.f32.mrf.mxu1 }
 0x2b7   :  { %v3026_v16 = vpop.eup %3025 }
 0x2b8   :  { %v1114_v43 = vmul.f32 %v3026_v16, %v3024_v41  ;;  %v3028_v47 = vpop.eup %3027  ;;  %v1113_v53 = vmul.f32 0.0, %v3026_v16 }
 0x2b9   :  { %v1110_v49 = vadd.f32 1.0, %v3028_v47  ;;  %v990_v47 = vadd.f32 %v3408_v17, %v3400_v61 }
 0x2ba   :  { %1116 = vrot.lane.b32.xlu0 %v1114_v43, %s3158_s14 }
 0x2bb   :  { %3029 = vrcp.f32 %v1110_v49 }
 0x2c8   :  { %v3030_v0 = vpop.eup %3029 }
 0x32c   :  { %v1117_v59 = vpop.permute.xlu0 %1116 }
 0x32d   :  { %v1119_v51 = vadd.f32 %v1117_v59, %v1113_v53 }
 0x32f   :  { %3031 = vtanh.f32 %v1119_v51 }
 0x33c   :  { %v3032_v1 = vpop.eup %3031 }
 0x33d   :  { %v1121_v2 = vmul.f32 %v3032_v1, %v3030_v0  ;;  %v992_v0 = vadd.f32 %v3412_v9, %v3410_v5 }
 0x33f   :  { %1123 = vrot.lane.b32.xlu0 %v1121_v2, %s3158_s14 }
 0x3b1   :  { %v1124_v3 = vpop.permute.xlu0 %1123 }
 0x3b2   :  { %2688 = vmatmul.mubr.msk.f32.vlgmr.msra.gmra.mxu0 %vm886_vm3, %v1124_v3 }
 0x3b3   :  { %1344 = vmatpush1.msra.mxu0 %v3272_v34  ;;  %1391 = vmatprep.mubr.f32.mxu0 %v3157_v63 }
 0x3b4   :  { %1345 = vmatprep.subr.mxu0 %v3275_v36 }
 0x3b5   :  { %1346 = vmatpush1.msra.mxu0 %v3278_v38 }
 0x3b6   :  { %1347 = vmatprep.subr.mxu0 %v3281_v40 }
 0x3b7   :  { %1348 = vmatpush1.msra.mxu0 %v3284_v42 }
 0x3b8   :  { %1349 = vmatprep.subr.mxu0 %v3287_v44 }
 0x3b9   :  { %1350 = vmatpush1.msra.mxu0 %v3290_v46 }
 0x3ba   :  { %1351 = vmatprep.subr.mxu0 %v3293_v48 }
 0x3bb   :  { %1352 = vmatpush1.msra.mxu0 %v3296_v50 }
 0x3bc   :  { %1353 = vmatprep.subr.mxu0 %v3299_v52 }
 0x3bd   :  { %1354 = vmatpush1.msra.mxu0 %v3302_v54 }
 0x3be   :  { %1355 = vmatprep.subr.mxu0 %v3305_v56 }
 0x3bf   :  { %1356 = vmatpush1.msra.mxu0 %v3308_v58 }
 0x3c0   :  { %1357 = vmatprep.subr.mxu0 %v3311_v60 }
 0x3c1   :  { %1358 = vmatpush1.msra.mxu0 %v3314_v62 }
 0x3c2   :  { %1543 = vmatprep.subr.mxu0 %v3269_v32 }
 0x472   :  { %v1193_v7 = vpop.f32.mrf.mxu0 }
 0x473   :  { %v1198_v14 = vadd.f32 %v1193_v7, %v984_v4 }
 0x474   :  { %v1195_v22 = vpop.f32.mrf.mxu0 }
 0x475   :  { %v2689_v18 = vmul.f32 -1.442695, %v1198_v14  ;;  %v1199_v13 = vadd.f32 %v1195_v22, %v986_v23 }
 0x477   :  { %3033 = vpow2.f32 %v2689_v18  ;;  %v2690_v12 = vmul.f32 -1.442695, %v1199_v13 }
 0x478   :  { %3035 = vtanh.f32 %v1199_v13 }
 0x484   :  { %v3034_v20 = vpop.eup %3033 }
 0x485   :  { %v1203_v27 = vadd.f32 1.0, %v3034_v20  ;;  %v3036_v28 = vpop.eup %3035 }
 0x487   :  { %3037 = vrcp.f32 %v1203_v27 }
 0x488   :  { %3039 = vpow2.f32 %v2690_v12 }
 0x494   :  { %v3038_v30 = vpop.eup %3037 }
 0x495   :  { %v1214_v10 = vmul.f32 %v3038_v30, %v3036_v28  ;;  %v3040_v6 = vpop.eup %3039  ;;  %v1213_v35 = vmul.f32 %v3038_v30, %v1119_v51 }
 0x496   :  { %v1210_v31 = vadd.f32 1.0, %v3040_v6 }
 0x497   :  { %1216 = vrot.lane.b32.xlu1 %v1214_v10, %s3158_s14 }
 0x498   :  { %3041 = vrcp.f32 %v1210_v31 }
 0x4a5   :  { %v3042_v15 = vpop.eup %3041 }
 0x509   :  { %v1217_v11 = vpop.permute.xlu1 %1216 }
 0x50a   :  { %v1219_v24 = vadd.f32 %v1217_v11, %v1213_v35 }
 0x50c   :  { %3043 = vtanh.f32 %v1219_v24 }
 0x519   :  { %v3044_v41 = vpop.eup %3043 }
 0x51a   :  { %v1221_v16 = vmul.f32 %v3044_v41, %v3042_v15 }
 0x51c   :  { %1223 = vrot.lane.b32.xlu1 %v1221_v16, %s3158_s14 }
 0x58e   :  { %v1224_v43 = vpop.permute.xlu1 %1223 }
 0x58f   :  { %2691 = vmatmul.mubr.msk.f32.vlgmr.msra.gmra.mxu1 %vm886_vm3, %v1224_v43 }
 0x590   :  { %1444 = vmatpush1.msra.mxu1 %v3272_v34  ;;  %1491 = vmatprep.mubr.f32.mxu1 %v3157_v63 }
 0x591   :  { %1445 = vmatprep.subr.mxu1 %v3275_v36 }
 0x592   :  { %1446 = vmatpush1.msra.mxu1 %v3278_v38 }
 0x593   :  { %1447 = vmatprep.subr.mxu1 %v3281_v40 }
 0x594   :  { %1448 = vmatpush1.msra.mxu1 %v3284_v42 }
 0x595   :  { %1449 = vmatprep.subr.mxu1 %v3287_v44 }
 0x596   :  { %1450 = vmatpush1.msra.mxu1 %v3290_v46 }
 0x597   :  { %1451 = vmatprep.subr.mxu1 %v3293_v48 }
 0x598   :  { %1452 = vmatpush1.msra.mxu1 %v3296_v50 }
 0x599   :  { %1453 = vmatprep.subr.mxu1 %v3299_v52 }
 0x59a   :  { %1454 = vmatpush1.msra.mxu1 %v3302_v54 }
 0x59b   :  { %1455 = vmatprep.subr.mxu1 %v3305_v56 }
 0x59c   :  { %1456 = vmatpush1.msra.mxu1 %v3308_v58 }
 0x59d   :  { %1457 = vmatprep.subr.mxu1 %v3311_v60 }
 0x59e   :  { %1458 = vmatpush1.msra.mxu1 %v3314_v62 }
 0x59f   :  { %1643 = vmatprep.subr.mxu1 %v3269_v32 }
 0x64f   :  { %v1293_v49 = vpop.f32.mrf.mxu1 }
 0x650   :  { %v1298_v53 = vadd.f32 %v1293_v49, %v990_v47 }
 0x651   :  { %v1295_v51 = vpop.f32.mrf.mxu1 }
 0x652   :  { %v2692_v59 = vmul.f32 -1.442695, %v1298_v53  ;;  %v1299_v1 = vadd.f32 %v1295_v51, %v992_v0 }
 0x654   :  { %3045 = vpow2.f32 %v2692_v59  ;;  %v2693_v18 = vmul.f32 -1.442695, %v1299_v1 }
 0x655   :  { %3047 = vtanh.f32 %v1299_v1 }
 0x661   :  { %v3046_v2 = vpop.eup %3045 }
 0x662   :  { %v1303_v3 = vadd.f32 1.0, %v3046_v2  ;;  %v3048_v4 = vpop.eup %3047 }
 0x664   :  { %3049 = vrcp.f32 %v1303_v3 }
 0x665   :  { %3051 = vpow2.f32 %v2693_v18 }
 0x671   :  { %v3050_v7 = vpop.eup %3049 }
 0x672   :  { %v1314_v14 = vmul.f32 %v3050_v7, %v3048_v4  ;;  %v3052_v61 = vpop.eup %3051  ;;  %v1313_v22 = vmul.f32 %v3050_v7, %v1219_v24 }
 0x673   :  { %v1310_v17 = vadd.f32 1.0, %v3052_v61 }
 0x674   :  { %1316 = vrot.lane.b32.xlu0 %v1314_v14, %s3158_s14 }
 0x675   :  { %3053 = vrcp.f32 %v1310_v17 }
 0x682   :  { %v3054_v9 = vpop.eup %3053 }
 0x6e6   :  { %v1317_v23 = vpop.permute.xlu0 %1316 }
 0x6e7   :  { %v1319_v13 = vadd.f32 %v1317_v23, %v1313_v22 }
 0x6e9   :  { %3055 = vtanh.f32 %v1319_v13 }
 0x6f6   :  { %v3056_v20 = vpop.eup %3055 }
 0x6f7   :  { %v1321_v27 = vmul.f32 %v3056_v20, %v3054_v9 }
 0x6f9   :  { %1323 = vrot.lane.b32.xlu1 %v1321_v27, %s3158_s14 }
 0x76b   :  { %v1324_v28 = vpop.permute.xlu1 %1323 }
 0x76c   :  { %2694 = vmatmul.mubr.msk.f32.vlgmr.msra.gmra.mxu0 %vm886_vm3, %v1324_v28 }
 0x76d   :  { %1544 = vmatpush1.msra.mxu0 %v3272_v34  ;;  %1591 = vmatprep.mubr.f32.mxu0 %v3157_v63 }
 0x76e   :  { %1545 = vmatprep.subr.mxu0 %v3275_v36 }
 0x76f   :  { %1546 = vmatpush1.msra.mxu0 %v3278_v38 }
 0x770   :  { %1547 = vmatprep.subr.mxu0 %v3281_v40 }
 0x771   :  { %1548 = vmatpush1.msra.mxu0 %v3284_v42 }
 0x772   :  { %1549 = vmatprep.subr.mxu0 %v3287_v44 }
 0x773   :  { %1550 = vmatpush1.msra.mxu0 %v3290_v46 }
 0x774   :  { %1551 = vmatprep.subr.mxu0 %v3293_v48 }
 0x775   :  { %1552 = vmatpush1.msra.mxu0 %v3296_v50 }
 0x776   :  { %1553 = vmatprep.subr.mxu0 %v3299_v52 }
 0x777   :  { %1554 = vmatpush1.msra.mxu0 %v3302_v54 }
 0x778   :  { %1555 = vmatprep.subr.mxu0 %v3305_v56 }
 0x779   :  { %1556 = vmatpush1.msra.mxu0 %v3308_v58 }
 0x77a   :  { %1557 = vmatprep.subr.mxu0 %v3311_v60 }
 0x77b   :  { %1558 = vmatpush1.msra.mxu0 %v3314_v62 }
 0x77c   :  { %1743 = vmatprep.subr.mxu0 %v3269_v32 }
 0x82c   :  { %v1393_v30 = vpop.f32.mrf.mxu0 }
 0x82d   :  { %v1398_v10 = vadd.f32 %v1393_v30, %v3415_v21 }
 0x82e   :  { %v1395_v6 = vpop.f32.mrf.mxu0 }
 0x82f   :  { %v2695_v12 = vmul.f32 -1.442695, %v1398_v10  ;;  %v1399_v31 = vadd.f32 %v1395_v6, %v3419_v8  ;;  %v1825_v6 = vld [vmem:[#allocation4 + $0x220] sm:$0xff] }
 0x831   :  { %3057 = vpow2.f32 %v2695_v12  ;;  %v2696_v16 = vmul.f32 -1.442695, %v1399_v31 }
 0x832   :  { %3059 = vtanh.f32 %v1399_v31 }
 0x83e   :  { %v3058_v35 = vpop.eup %3057 }
 0x83f   :  { %v1403_v11 = vadd.f32 1.0, %v3058_v35  ;;  %v3060_v24 = vpop.eup %3059  ;;  %v1824_v35 = vld [vmem:[#allocation4 + $0x210] sm:$0xff] }
 0x841   :  { %3061 = vrcp.f32 %v1403_v11  ;;  %v1823_v11 = vld [vmem:[%s3668_s3] sm:$0xff] }
 0x842   :  { %3063 = vpow2.f32 %v2696_v16 }
 0x84e   :  { %v3062_v15 = vpop.eup %3061 }
 0x84f   :  { %v1414_v41 = vmul.f32 %v3062_v15, %v3060_v24  ;;  %v3064_v32 = vpop.eup %3063  ;;  %v1413_v47 = vmul.f32 %v3062_v15, %v1319_v13 }
 0x850   :  { %v1410_v43 = vadd.f32 1.0, %v3064_v32  ;;  %v1822_v32 = vld [vmem:[#allocation4 + $0x400] sm:$0xff] }
 0x851   :  { %1416 = vrot.lane.b32.xlu0 %v1414_v41, %s3158_s14 }
 0x852   :  { %3065 = vrcp.f32 %v1410_v43 }
 0x85f   :  { %v3066_v53 = vpop.eup %3065 }
 0x8c3   :  { %v1417_v21 = vpop.permute.xlu0 %1416 }
 0x8c4   :  { %v1419_v49 = vadd.f32 %v1417_v21, %v1413_v47 }
 0x8c6   :  { %3067 = vtanh.f32 %v1419_v49 }
 0x8d3   :  { %v3068_v8 = vpop.eup %3067 }
 0x8d4   :  { %v1421_v59 = vmul.f32 %v3068_v8, %v3066_v53 }
 0x8d6   :  { %1423 = vrot.lane.b32.xlu1 %v1421_v59, %s3158_s14 }
 0x948   :  { %v1424_v51 = vpop.permute.xlu1 %1423 }
 0x949   :  { %2697 = vmatmul.mubr.msk.f32.vlgmr.msra.gmra.mxu1 %vm886_vm3, %v1424_v51  ;;  %v1978_v51 = vld [vmem:[#allocation4 + $0x260] sm:$0xff] }
 0x94a   :  { %1644 = vmatpush1.msra.mxu1 %v3272_v34  ;;  %1691 = vmatprep.mubr.f32.mxu1 %v3157_v63 }
 0x94b   :  { %1645 = vmatprep.subr.mxu1 %v3275_v36 }
 0x94c   :  { %1646 = vmatpush1.msra.mxu1 %v3278_v38 }
 0x94d   :  { %1647 = vmatprep.subr.mxu1 %v3281_v40 }
 0x94e   :  { %1648 = vmatpush1.msra.mxu1 %v3284_v42 }
 0x94f   :  { %1649 = vmatprep.subr.mxu1 %v3287_v44 }
 0x950   :  { %1650 = vmatpush1.msra.mxu1 %v3290_v46 }
 0x951   :  { %1651 = vmatprep.subr.mxu1 %v3293_v48 }
 0x952   :  { %1652 = vmatpush1.msra.mxu1 %v3296_v50 }
 0x953   :  { %1653 = vmatprep.subr.mxu1 %v3299_v52 }
 0x954   :  { %1654 = vmatpush1.msra.mxu1 %v3302_v54 }
 0x955   :  { %1655 = vmatprep.subr.mxu1 %v3305_v56 }
 0x956   :  { %1656 = vmatpush1.msra.mxu1 %v3308_v58 }
 0x957   :  { %1657 = vmatprep.subr.mxu1 %v3311_v60 }
 0x958   :  { %1658 = vmatpush1.msra.mxu1 %v3314_v62 }
 0x959   :  { %2916 = vmatprep.subr.mxu1 %v3157_v63 }
 0xa09   :  { %v1493_v0 = vpop.f32.mrf.mxu1 }
 0xa0a   :  { %v1498_v1 = vadd.f32 %v1493_v0, %v3422_v25  ;;  %v1977_v0 = vld [vmem:[#allocation4 + $0x250] sm:$0xff] }
 0xa0b   :  { %v1495_v3 = vpop.f32.mrf.mxu1 }
 0xa0c   :  { %v2698_v2 = vmul.f32 -1.442695, %v1498_v1  ;;  %v1499_v4 = vadd.f32 %v1495_v3, %v3425_v29  ;;  %v1976_v1 = vld [vmem:[#allocation4 + $0x240] sm:$0xff] }
 0xa0e   :  { %3069 = vpow2.f32 %v2698_v2  ;;  %v2699_v22 = vmul.f32 -1.442695, %v1499_v4 }
 0xa0f   :  { %3071 = vtanh.f32 %v1499_v4 }
 0xa1b   :  { %v3070_v7 = vpop.eup %3069 }
 0xa1c   :  { %v1503_v14 = vadd.f32 1.0, %v3070_v7  ;;  %v3072_v18 = vpop.eup %3071 }
 0xa1e   :  { %3073 = vrcp.f32 %v1503_v14 }
 0xa1f   :  { %3075 = vpow2.f32 %v2699_v22 }
 0xa2b   :  { %v3074_v61 = vpop.eup %3073 }
 0xa2c   :  { %v1514_v17 = vmul.f32 %v3074_v61, %v3072_v18  ;;  %v3076_v23 = vpop.eup %3075  ;;  %v1513_v9 = vmul.f32 %v3074_v61, %v1419_v49 }
 0xa2d   :  { %v1510_v13 = vadd.f32 1.0, %v3076_v23  ;;  %v1899_v23 = vld [vmem:[%s3670_s5 + $0x2] ss:$0 sm:$0xff] }
 0xa2e   :  { %1516 = vrot.lane.b32.xlu0 %v1514_v17, %s3158_s14 }
 0xa2f   :  { %3077 = vrcp.f32 %v1510_v13 }
 0xa3c   :  { %v3078_v27 = vpop.eup %3077 }
 0xaa0   :  { %v1517_v25 = vpop.permute.xlu0 %1516 }
 0xaa1   :  { %v1519_v20 = vadd.f32 %v1517_v25, %v1513_v9 }
 0xaa3   :  { %3079 = vtanh.f32 %v1519_v20 }
 0xab0   :  { %v3080_v29 = vpop.eup %3079 }
 0xab1   :  { %v1521_v28 = vmul.f32 %v3080_v29, %v3078_v27 }
 0xab3   :  { %1523 = vrot.lane.b32.xlu1 %v1521_v28, %s3158_s14 }
 0xb25   :  { %v1524_v30 = vpop.permute.xlu1 %1523 }
 0xb26   :  { %2700 = vmatmul.mubr.msk.f32.vlgmr.msra.gmra.mxu0 %vm886_vm3, %v1524_v30  ;;  %v2214_v30 = vld [vmem:[#allocation4 + $0x270] sm:$0xff] }
 0xb27   :  { %1744 = vmatpush1.msra.mxu0 %v3272_v34  ;;  %1791 = vmatprep.mubr.f32.mxu0 %v3157_v63 }
 0xb28   :  { %1745 = vmatprep.subr.mxu0 %v3275_v36 }
 0xb29   :  { %1746 = vmatpush1.msra.mxu0 %v3278_v38 }
 0xb2a   :  { %1747 = vmatprep.subr.mxu0 %v3281_v40 }
 0xb2b   :  { %1748 = vmatpush1.msra.mxu0 %v3284_v42 }
 0xb2c   :  { %1749 = vmatprep.subr.mxu0 %v3287_v44 }
 0xb2d   :  { %1750 = vmatpush1.msra.mxu0 %v3290_v46 }
 0xb2e   :  { %1751 = vmatprep.subr.mxu0 %v3293_v48 }
 0xb2f   :  { %1752 = vmatpush1.msra.mxu0 %v3296_v50 }
 0xb30   :  { %1753 = vmatprep.subr.mxu0 %v3299_v52 }
 0xb31   :  { %1754 = vmatpush1.msra.mxu0 %v3302_v54 }
 0xb32   :  { %1755 = vmatprep.subr.mxu0 %v3305_v56 }
 0xb33   :  { %1756 = vmatpush1.msra.mxu0 %v3308_v58 }
 0xb34   :  { %1757 = vmatprep.subr.mxu0 %v3311_v60 }
 0xb35   :  { %1758 = vmatpush1.msra.mxu0 %v3314_v62 }
 0xb36   :  { %2939 = vmatprep.subr.mxu0 %v3157_v63 }
 0xbe6   :  { %v1593_v34 = vpop.f32.mrf.mxu0 }
 0xbe7   :  { %v1598_v36 = vadd.f32 %v1593_v34, %v3428_v26  ;;  %v2213_v34 = vld [vmem:[%s3667_s2] sm:$0x3]  ;;  %s2130_s2 = sld [smem:[#allocation3]] }
 0xbe8   :  { %v1595_v40 = vpop.f32.mrf.mxu0 }
 0xbe9   :  { %v2701_v38 = vmul.f32 -1.442695, %v1598_v36  ;;  %v1599_v42 = vadd.f32 %v1595_v40, %v3431_v33 }
 0xbeb   :  { %3081 = vpow2.f32 %v2701_v38  ;;  %v2702_v54 = vmul.f32 -1.442695, %v1599_v42 }
 0xbec   :  { %3083 = vtanh.f32 %v1599_v42 }
 0xbf8   :  { %v3082_v44 = vpop.eup %3081 }
 0xbf9   :  { %v1603_v46 = vadd.f32 1.0, %v3082_v44  ;;  %v3084_v48 = vpop.eup %3083  ;;  %v1022_v44 = vadd.f32 %v3486_v45, %v3410_v5  ;;  %v2128_v5 = vand.u32 127, %v876_v55 }
 0xbfb   :  { %3085 = vrcp.f32 %v1603_v46 }
 0xbfc   :  { %3087 = vpow2.f32 %v2702_v54 }
 0xc08   :  { %v3086_v50 = vpop.eup %3085 }
 0xc09   :  { %v1614_v52 = vmul.f32 %v3086_v50, %v3084_v48  ;;  %v3088_v56 = vpop.eup %3087  ;;  %v1613_v60 = vmul.f32 %v3086_v50, %v1519_v20 }
 0xc0a   :  { %v1610_v58 = vadd.f32 1.0, %v3088_v56 }
 0xc0b   :  { %1616 = vrot.lane.b32.xlu0 %v1614_v52, %s3158_s14 }
 0xc0c   :  { %3089 = vrcp.f32 %v1610_v58 }
 0xc19   :  { %v3090_v10 = vpop.eup %3089 }
 0xc7d   :  { %v1617_v62 = vpop.permute.xlu0 %1616 }
 0xc7e   :  { %v1619_v26 = vadd.f32 %v1617_v62, %v1613_v60  ;;  %v2135_v60 = vstv %s2713_s20  ;;  %v2053_v62 = vld [vmem:[%s3670_s5 + $0x3] ss:$0 sm:$0xff] }
 0xc80   :  { %3091 = vtanh.f32 %v1619_v26 }
 0xc8d   :  { %v3092_v33 = vpop.eup %3091 }
 0xc8e   :  { %v1621_v12 = vmul.f32 %v3092_v33, %v3090_v10 }
 0xc90   :  { %1623 = vrot.lane.b32.xlu1 %v1621_v12, %s3158_s14 }
 0xd02   :  { %v1624_v31 = vpop.permute.xlu1 %1623 }
 0xd03   :  { %2703 = vmatmul.mubr.msk.f32.vlgmr.msra.gmra.mxu1 %vm886_vm3, %v1624_v31 }
 0xd04   :  { %2917 = vmatpush3.msra.mxu1 %v1825_v6  ;;  %2920 = vmatprep.mubr.msk.f32.mxu1 %vm3159_vm4, %v3157_v63 }
 0xd05   :  { %2918 = vmatprep.subr.mxu1 %v3157_v63 }
 0xd06   :  { %2919 = vmatpush3.msra.mxu1 %v1824_v35 }
 0xd07   :  { %2921 = vmatmul.mubr.msk.f32.vlgmr.msra.gmra.mxu1 %vm55_vm0, %v1823_v11  ;;  %2923 = vmatprep.subr.mxu1 %v3157_v63 }
 0xd08   :  { %2925 = vmatprep.mubr.msk.f32.mxu1 %vm3159_vm4, %v3157_v63 }
 0xdc3   :  { %v1693_v24 = vpop.f32.mrf.mxu1 }
 0xdc4   :  { %v1698_v15 = vadd.f32 %v1693_v24, %v3434_v37 }
 0xdc5   :  { %v1695_v41 = vpop.f32.mrf.mxu1 }
 0xdc6   :  { %v2704_v16 = vmul.f32 -1.442695, %v1698_v15  ;;  %v1699_v21 = vadd.f32 %v1695_v41, %v3437_v19  ;;  %v1975_v19 = vld [vmem:[#allocation4 + $0x230] sm:$0xff]  ;;  %v2300_v41 = vld [vmem:[#allocation4 + $0x320] sm:$0xff] }
 0xdc7   :  { %v1895_v43 = vpop.f32.mrf.mxu1  ;;  %v2301_v15 = vld [vmem:[#allocation4 + $0x330] sm:$0xff] }
 0xdc8   :  { %3093 = vpow2.f32 %v2704_v16  ;;  %2924 = vmatpush3.msra.mxu1 %v1895_v43  ;;  %v2705_v2 = vmul.f32 -1.442695, %v1699_v21  ;;  %v2299_v16 = vld [vmem:[#allocation4 + $0x310] sm:$0xff] }
 0xdc9   :  { %v2922_v47 = vpop.f32.mrf.mxu1  ;;  %2926 = vmatmul.mubr.msk.f32.vlgmr.msra.gmra.mxu1 %vm1900_vm5, %v1822_v32  ;;  %2928 = vmatprep.subr.mxu1 %v3157_v63  ;;  %3095 = vtanh.f32 %v1699_v21 }
 0xdca   :  { %2936 = vmatprep.mubr.msk.f32.mxu1 %vm3159_vm4, %v3157_v63  ;;  %2929 = vmatpush3.msra.mxu1 %v1978_v51  ;;  %v2451_v51 = vld [vmem:[#allocation4 + $0x350] sm:$0xff] }
 0xdcb   :  { %2930 = vmatprep.subr.mxu1 %v3157_v63 }
 0xdcc   :  { %2931 = vmatpush3.msra.mxu1 %v1977_v0 }
 0xdcd   :  { %2932 = vmatprep.subr.mxu1 %v3157_v63 }
 0xdce   :  { %2933 = vmatpush3.msra.mxu1 %v1976_v1 }
 0xdcf   :  { %2934 = vmatprep.subr.mxu1 %v3157_v63 }
 0xdd0   :  { %2935 = vmatpush3.msra.mxu1 %v1975_v19  ;;  %v2450_v19 = vld [vmem:[#allocation4 + $0x340] sm:$0xff] }
 0xdd1   :  { %2949 = vmatprep.subr.mxu1 %v3157_v63 }
 0xdd5   :  { %v3094_v49 = vpop.eup %3093 }
 0xdd6   :  { %v1703_v53 = vadd.f32 1.0, %v3094_v49  ;;  %v3096_v37 = vpop.eup %3095  ;;  %v2453_v49 = vld [vmem:[#allocation4 + $0x370] sm:$0xff] }
 0xdd8   :  { %3097 = vrcp.f32 %v1703_v53  ;;  %v2452_v53 = vld [vmem:[#allocation4 + $0x360] sm:$0xff] }
 0xdd9   :  { %3099 = vpow2.f32 %v2705_v2  ;;  %v2297_v2 = vld [vmem:[#allocation4 + $0x2f0] sm:$0xff] }
 0xde5   :  { %v3098_v8 = vpop.eup %3097 }
 0xde6   :  { %v1714_v59 = vmul.f32 %v3098_v8, %v3096_v37  ;;  %v3100_v3 = vpop.eup %3099  ;;  %v1713_v7 = vmul.f32 %v3098_v8, %v1619_v26  ;;  %v2215_v37 = vld [vmem:[%s3670_s5 + $0x4] ss:$0 sm:$0xff] }
 0xde7   :  { %v1710_v4 = vadd.f32 1.0, %v3100_v3 }
 0xde8   :  { %1716 = vrot.lane.b32.xlu0 %v1714_v59, %s3158_s14 }
 0xde9   :  { %3101 = vrcp.f32 %v1710_v4  ;;  %v2296_v4 = vld [vmem:[#allocation4 + $0x2e0] sm:$0xff] }
 0xdf6   :  { %v3102_v61 = vpop.eup %3101 }
 0xe5a   :  { %v1717_v14 = vpop.permute.xlu0 %1716 }
 0xe5b   :  { %v3582_v18 = vadd.f32 %v1717_v14, %v1713_v7  ;;  %v2295_v14 = vld [vmem:[#allocation4 + $0x2d0] sm:$0xff] }
 0xe5d   :  { %3103 = vtanh.f32 %v3582_v18 }
 0xe6a   :  { %v3104_v17 = vpop.eup %3103 }
 0xe6b   :  { %v1721_v22 = vmul.f32 %v3104_v17, %v3102_v61  ;;  %v2293_v61 = vld [vmem:[#allocation4 + $0x2b0] sm:$0xff]  ;;  %v2292_v17 = vld [vmem:[#allocation4 + $0x2a0] sm:$0xff] }
 0xe6d   :  { %1723 = vrot.lane.b32.xlu1 %v1721_v22, %s3158_s14  ;;  %v2291_v22 = vld [vmem:[#allocation4 + $0x290] sm:$0xff] }
 0xe89   :  { %v1970_v13 = vpop.f32.mrf.mxu1 }
 0xe8a   :  { %v1971_v9 = vadd.f32 %v1970_v13, %v1899_v23  ;;  %v2290_v23 = vld [vmem:[#allocation4 + $0x280] sm:$0xff] }
 0xe8b   :  { %v2927_v25 = vpop.f32.mrf.mxu1 }
 0xe8c   :  { %v1974_v20 = vmax.f32 %v1971_v9, 0.0  ;;  %v2538_v9 = vld [vmem:[#allocation4 + $0x3f0] sm:$0xff]  ;;  %v2537_v25 = vld [vmem:[#allocation4 + $0x3e0] sm:$0xff] }
 0xe8e   :  { %2937 = vmatmul.mubr.msk.f32.vlgmr.msra.gmra.mxu1 %vm1979_vm6, %v1974_v20  ;;  %v2536_v20 = vld [vmem:[#allocation4 + $0x3d0] sm:$0xff] }
 0xe8f   :  { %2951 = vmatprep.mubr.msk.f32.mxu1 %vm3159_vm4, %v3157_v63  ;;  %2950 = vmatpush3.msra.mxu1 %v2214_v30 }
 0xe90   :  { %2954 = vmatprep.subr.mxu1 %v3157_v63 }
 0xe92   :  { %2952 = vmatmul.mubr.msk.f32.vlgmr.msra.gmra.mxu1 %vm1900_vm5, %v2213_v34  ;;  %v2533_v34 = vld [vmem:[#allocation4 + $0x3a0] sm:$0xff] }
 0xe93   :  { %2962 = vmatprep.mubr.msk.f32.mxu1 %vm3159_vm4, %v3157_v63  ;;  %2955 = vmatpush3.msra.mxu1 %v2301_v15 }
 0xe94   :  { %2956 = vmatprep.subr.mxu1 %v3157_v63 }
 0xe95   :  { %2957 = vmatpush3.msra.mxu1 %v2300_v41 }
 0xe96   :  { %2958 = vmatprep.subr.mxu1 %v3157_v63 }
 0xe97   :  { %2959 = vmatpush3.msra.mxu1 %v2299_v16 }
 0xe98   :  { %2960 = vmatprep.subr.mxu1 %v3157_v63 }
 0xedf   :  { %v1724_v27 = vpop.permute.xlu1 %1723 }
 0xee0   :  { %2706 = vmatmul.mubr.msk.f32.vlgmr.msra.gmra.mxu0 %vm886_vm3, %v1724_v27  ;;  %v2535_v27 = vld [vmem:[#allocation4 + $0x3c0] sm:$0xff] }
 0xee1   :  { %2941 = vmatprep.mubr.msk.f32.mxu0 %vm3159_vm4, %v3157_v63 }
 0xf4e   :  { %v2049_v29 = vpop.f32.mrf.mxu1 }
 0xf4f   :  { %2940 = vmatpush3.msra.mxu0 %v2049_v29 }
 0xf50   :  { %v2938_v28 = vpop.f32.mrf.mxu1  ;;  %2942 = vmatmul.mubr.msk.f32.vlgmr.msra.gmra.mxu0 %vm1900_vm5, %v1822_v32  ;;  %2944 = vmatprep.subr.mxu0 %v3157_v63  ;;  %v2298_v32 = vld [vmem:[#allocation4 + $0x300] sm:$0xff] }
 0xf51   :  { %2946 = vmatprep.mubr.msk.f32.mxu0 %vm3159_vm4, %v3157_v63  ;;  %2961 = vmatpush3.msra.mxu1 %v2298_v32  ;;  %v2534_v28 = vld [vmem:[#allocation4 + $0x3b0] sm:$0xff] }
 0xf52   :  { %2965 = vmatprep.subr.mxu1 %v3157_v63  ;;  %v2285_v8 = vpop.f32.mrf.mxu1 }
 0xf53   :  { %v2286_v59 = vadd.f32 %v2285_v8, %v2215_v37 }
 0xf54   :  { %v2953_v0 = vpop.f32.mrf.mxu1 }
 0xf55   :  { %v2289_v1 = vmax.f32 %v2286_v59, 0.0 }
 0xfa0   :  { %v1793_v36 = vpop.f32.mrf.mxu0 }
 0xfa1   :  { %v1798_v38 = vadd.f32 %v1793_v36, %v3440_v39  ;;  %v2131_v39 = vstv %s2130_s2  ;;  %v2532_v36 = vld [vmem:[#allocation4 + $0x390] sm:$0xff] }
 0xfa2   :  { %v1795_v42 = vpop.f32.mrf.mxu0  ;;  %v2132_v58 = vsel %vm2129_vm7, %v2131_v39, 0 }
 0xfa3   :  { %v2707_v40 = vmul.f32 -1.442695, %v1798_v38  ;;  %v1799_v46 = vadd.f32 %v1795_v42, %v1022_v44  ;;  %v2136_v45 = vsel %vm2133_vm8, %v2135_v60, %v2132_v58  ;;  %v2531_v38 = vld [vmem:[#allocation4 + $0x380] sm:$0xff] }
 0xfa4   :  { %vm2137_vm9 = vcmp.eq.s32.totalorder %v2128_v5, %v2136_v45 }
 0xfa5   :  { %3105 = vpow2.f32 %v2707_v40  ;;  %v2714_v6 = vsel %vm2137_vm9, 1.0, %v3157_v63  ;;  %v2708_v55 = vmul.f32 -1.442695, %v1799_v46 }
 0xfa6   :  { %3107 = vtanh.f32 %v1799_v46 }
 0xfb2   :  { %v3106_v48 = vpop.eup %3105 }
 0xfb3   :  { %v1803_v50 = vadd.f32 1.0, %v3106_v48  ;;  %v3108_v52 = vpop.eup %3107 }
 0xfb5   :  { %3109 = vrcp.f32 %v1803_v50  ;;  %v2528_v50 = vld [vmem:[%s3670_s5 + $0x5] ss:$0 sm:$0xff] }
 0xfb6   :  { %3111 = vpow2.f32 %v2708_v55 }
 0xfc2   :  { %v3110_v54 = vpop.eup %3109 }
 0xfc3   :  { %v1814_v56 = vmul.f32 %v3110_v54, %v3108_v52  ;;  %v3112_v57 = vpop.eup %3111  ;;  %v1813_v35 = vmul.f32 %v3110_v54, %v3582_v18  ;;  %v2294_v18 = vld [vmem:[#allocation4 + $0x2c0] sm:$0xff] }
 0xfc4   :  { %v1810_v31 = vadd.f32 1.0, %v3112_v57 }
 0xfc5   :  { %1816 = vrot.lane.b32.xlu0 %v1814_v56, %s3158_s14 }
 0xfc6   :  { %3113 = vrcp.f32 %v1810_v31 }
 0xfd3   :  { %v3114_v43 = vpop.eup %3113 }
0x1010   :  { %v2120_v26 = vpop.f32.mrf.mxu0 }
0x1011   :  { %v2121_v10 = vadd.f32 %v2120_v26, %v2053_v62 }
0x1012   :  { %v2943_v33 = vpop.f32.mrf.mxu0 }
0x1013   :  { %v2124_v12 = vmax.f32 %v2121_v10, 0.0 }
0x1015   :  { %2945 = vmatpush3.msra.mxu0 %v2124_v12 }
0x1016   :  { %2947 = vmatmul.mubr.msk.f32.vlgmr.msra.gmra.mxu0 %vm1900_vm5, %v2714_v6  ;;  %2984 = vmatprep.subr.mxu0 %v3157_v63 }
0x1017   :  { %2992 = vmatprep.mubr.msk.f32.mxu0 %vm3159_vm4, %v3157_v63  ;;  %2985 = vmatpush3.msra.mxu0 %v2453_v49 }
0x1018   :  { %2986 = vmatprep.subr.mxu0 %v3157_v63 }
0x1019   :  { %2987 = vmatpush3.msra.mxu0 %v2452_v53 }
0x101a   :  { %2988 = vmatprep.subr.mxu0 %v3157_v63 }
0x101b   :  { %2989 = vmatpush3.msra.mxu0 %v2451_v51 }
0x101c   :  { %2990 = vmatprep.subr.mxu0 %v3157_v63 }
0x101d   :  { %2991 = vmatpush3.msra.mxu0 %v2450_v19 }
0x101e   :  { %2993 = vmatmul.mubr.msk.f32.vlgmr.msra.gmra.mxu0 %vm1979_vm6, %v2289_v1  ;;  %2995 = vmatprep.subr.mxu0 %v3157_v63 }
0x101f   :  { %3011 = vmatprep.mubr.msk.f32.mxu0 %vm3159_vm4, %v3157_v63  ;;  %2996 = vmatpush3.msra.mxu0 %v2538_v9 }
0x1020   :  { %2997 = vmatprep.subr.mxu0 %v3157_v63 }
0x1021   :  { %2998 = vmatpush3.msra.mxu0 %v2537_v25 }
0x1022   :  { %2999 = vmatprep.subr.mxu0 %v3157_v63 }
0x1023   :  { %3000 = vmatpush3.msra.mxu0 %v2536_v20 }
0x1024   :  { %3001 = vmatprep.subr.mxu0 %v3157_v63 }
0x1025   :  { %3002 = vmatpush3.msra.mxu0 %v2535_v27 }
0x1026   :  { %3003 = vmatprep.subr.mxu0 %v3157_v63 }
0x1027   :  { %3004 = vmatpush3.msra.mxu0 %v2534_v28 }
0x1028   :  { %3005 = vmatprep.subr.mxu0 %v3157_v63 }
0x1029   :  { %3006 = vmatpush3.msra.mxu0 %v2533_v34 }
0x102a   :  { %3007 = vmatprep.subr.mxu0 %v3157_v63 }
0x102b   :  { %3008 = vmatpush3.msra.mxu0 %v2532_v36 }
0x102c   :  { %3009 = vmatprep.subr.mxu0 %v3157_v63 }
0x102d   :  { %3010 = vmatpush3.msra.mxu0 %v2531_v38 }
0x1037   :  { %v1817_v11 = vpop.permute.xlu0 %1816 }
0x1038   :  { %v1819_v24 = vadd.f32 %v1817_v11, %v1813_v35 }
0x103a   :  { %3115 = vtanh.f32 %v1819_v24 }
0x1047   :  { %v3116_v47 = vpop.eup %3115 }
0x1048   :  { %v1821_v21 = vmul.f32 %v3116_v47, %v3114_v43 }
0x104a   :  { %2376 = vrot.lane.b32.xlu1 %v1821_v21, %s3158_s14 }
0x10bc   :  { %v2377_v13 = vpop.permute.xlu1 %2376 }
0x10d6   :  { %v2209_v3 = vpop.f32.mrf.mxu0 }
0x10d7   :  { %2963 = vmatmul.mubr.msk.f32.vlgmr.msra.gmra.mxu1 %vm1979_vm6, %v2209_v3 }
0x10d8   :  { %2966 = vmatpush3.msra.mxu1 %v2297_v2  ;;  %v2948_v7 = vpop.f32.mrf.mxu0  ;;  %2981 = vmatprep.mubr.msk.f32.mxu1 %vm3159_vm4, %v3157_v63 }
0x10d9   :  { %2967 = vmatprep.subr.mxu1 %v3157_v63 }
0x10da   :  { %2968 = vmatpush3.msra.mxu1 %v2296_v4 }
0x10db   :  { %2969 = vmatprep.subr.mxu1 %v3157_v63 }
0x10dc   :  { %2970 = vmatpush3.msra.mxu1 %v2295_v14 }
0x10dd   :  { %2971 = vmatprep.subr.mxu1 %v3157_v63 }
0x10de   :  { %2972 = vmatpush3.msra.mxu1 %v2294_v18  ;;  %v2523_v29 = vpop.f32.mrf.mxu0 }
0x10df   :  { %2973 = vmatprep.subr.mxu1 %v3157_v63 }
0x10e0   :  { %2974 = vmatpush3.msra.mxu1 %v2293_v61  ;;  %v2994_v30 = vpop.f32.mrf.mxu0 }
0x10e1   :  { %2975 = vmatprep.subr.mxu1 %v3157_v63 }
0x10e2   :  { %2976 = vmatpush3.msra.mxu1 %v2292_v17 }
0x10e3   :  { %2977 = vmatprep.subr.mxu1 %v3157_v63 }
0x10e4   :  { %2978 = vmatpush3.msra.mxu1 %v2291_v22 }
0x10e5   :  { %2979 = vmatprep.subr.mxu1 %v3157_v63  ;;  %v2539_v63 = vld [vmem:[%s3670_s5 + $0x6] ss:$0 sm:$0xff] }
0x10e6   :  { %2980 = vmatpush3.msra.mxu1 %v2290_v23 }
0x10e7   :  { %2982 = vmatmul.mubr.msk.f32.vlgmr.msra.gmra.mxu1 %vm886_vm3, %v2377_v13 }
0x1197   :  { %v2371_v40 = vpop.f32.mrf.mxu1 }
0x1199   :  { %v2964_v42 = vpop.f32.mrf.mxu1 }
0x11a7   :  { %v2446_v44 = vpop.f32.mrf.mxu1 }
0x11a8   :  { %v2447_v46 = vadd.f32 %v2446_v44, %v2371_v40 }
0x11a9   :  { %v2983_v48 = vpop.f32.mrf.mxu1 }
0x11aa   :  { %v2527_v52 = vadd.f32 %v2523_v29, %v2447_v46 }
0x11ac   :  { %v2529_v54 = vadd.f32 %v2528_v50, %v2527_v52 }
0x11ae   :  { %v2530_v56 = vmax.f32 %v2529_v54, 0.0 }
0x11b0   :  { %3012 = vmatmul.mubr.msk.f32.vlgmr.msra.gmra.mxu0 %vm886_vm3, %v2530_v56 }
0x1270   :  { %v2609_v39 = vpop.f32.mrf.mxu0 }
0x1271   :  { %v2610_v58 = vadd.f32 %v2609_v39, %v2539_v63 }
0x1272   :  { %v3013_v60 = vpop.f32.mrf.mxu0 }
0x1273   :  { %2614 = vst.msk [vmem:[%s3671_s6] sm:$0x3] %vm2613_vm10, %v2610_v58 }
0x1274   :  { %2619 = vsyncpa [#allocation5], 1 }

</bundles_post_ra>
